<compile_context>
chip_gen: v6e
topology: v6e:2x2x1
jax: 0.10.0
libtpu: 0.0.40
codegen_flags: <defaults>
</compile_context>

<pallas_src>
import jax
import jax.numpy as jnp
from jax.experimental import pallas as pl
from jax.experimental.pallas import tpu as pltpu

# ---- small, self-consistent shapes (module implies C = n_heads * head_size) ----
B = 2
T = 16
N_EMBED = 128
N_HEADS = 4
HEAD_SIZE = N_EMBED // N_HEADS
FF_HIDDEN = 4 * N_EMBED
BT = B * T
LN_EPS = 1e-5


def encoder_kernel(x_ref, g1_ref, b1_ref, wqkv_ref, g2_ref, b2_ref,
                   w1_ref, fb1_ref, w2_ref, fb2_ref, o_ref):
    """Single grid step: whole (B*T, C) problem is VMEM resident (<1 MB)."""
    x = x_ref[...]                                            # (BT, C) f32

    # --- attn_norm: LayerNorm over last dim (biased variance, eps=1e-5) ---
    mu = jnp.mean(x, axis=-1, keepdims=True)
    var = jnp.mean((x - mu) ** 2, axis=-1, keepdims=True)
    h = (x - mu) * jax.lax.rsqrt(var + LN_EPS)
    h = h * g1_ref[0] + b1_ref[0]                             # (BT, C)

    # --- fused QKV projection: one lane-dense (BT,C)@(C,3C) bf16 matmul ---
    #     (the C**-0.5 attention scale is pre-folded into the Q columns)
    qkv = jnp.dot(h.astype(jnp.bfloat16), wqkv_ref[...],
                  preferred_element_type=jnp.float32)         # (BT, 3C) f32
    q = qkv[:, 0:N_EMBED].astype(jnp.bfloat16)
    k = qkv[:, N_EMBED:2 * N_EMBED].astype(jnp.bfloat16)
    v = qkv[:, 2 * N_EMBED:3 * N_EMBED].astype(jnp.bfloat16)

    # --- per-(batch, head) attention; head outputs stay in vregs (no scratch) ---
    rows = []
    for b in range(B):                                        # static: B = 2
        r0 = b * T
        heads = []
        for hd in range(N_HEADS):                             # static: 4 heads
            c0 = hd * HEAD_SIZE
            qb = q[r0:r0 + T, c0:c0 + HEAD_SIZE]              # (T, hs) bf16
            kb = k[r0:r0 + T, c0:c0 + HEAD_SIZE]
            vb = v[r0:r0 + T, c0:c0 + HEAD_SIZE]
            s = jax.lax.dot_general(                          # contract head dim (no k.T)
                qb, kb, (((1,), (1,)), ((), ())),
                preferred_element_type=jnp.float32)           # (T, T) f32
            s = s - jnp.max(s, axis=-1, keepdims=True)
            p = jnp.exp(s)
            p = p * pl.reciprocal(jnp.sum(p, axis=-1, keepdims=True), approx=True)
            heads.append(jnp.dot(p.astype(jnp.bfloat16), vb,
                                 preferred_element_type=jnp.float32))  # (T, hs)
        rows.append(jnp.concatenate(heads, axis=-1))          # (T, C)
    attn = jnp.concatenate(rows, axis=0)                      # (BT, C) f32

    # TODO(synk): dropout layers (p=0.3) omitted — eval/inference semantics (identity).
    x1 = x + attn                                             # residual 1

    # --- ffw_norm ---
    mu2 = jnp.mean(x1, axis=-1, keepdims=True)
    var2 = jnp.mean((x1 - mu2) ** 2, axis=-1, keepdims=True)
    h2 = (x1 - mu2) * jax.lax.rsqrt(var2 + LN_EPS)
    h2 = h2 * g2_ref[0] + b2_ref[0]

    # --- FeedForward: Linear(C,4C) -> ReLU -> Linear(4C,C), bf16 MXU / f32 acc ---
    ff = jnp.dot(h2.astype(jnp.bfloat16), w1_ref[...],
                 preferred_element_type=jnp.float32) + fb1_ref[0]
    ff = jnp.maximum(ff, 0.0)
    ff = jnp.dot(ff.astype(jnp.bfloat16), w2_ref[...],
                 preferred_element_type=jnp.float32) + fb2_ref[0]

    o_ref[...] = x1 + ff                                      # residual 2


@jax.jit
def encoder_forward(x, g1, b1, wq, wk, wv, g2, b2, w1, fb1, w2, fb2):
    # One-time wrapper preprocessing: fuse per-head (H, C, hs) weights into a single
    # (C, 3C) bf16 matrix with head-contiguous columns; fold scale into Q.
    scale = float(N_EMBED) ** -0.5
    wq_c = jnp.transpose(wq, (1, 0, 2)).reshape(N_EMBED, N_EMBED) * scale
    wk_c = jnp.transpose(wk, (1, 0, 2)).reshape(N_EMBED, N_EMBED)
    wv_c = jnp.transpose(wv, (1, 0, 2)).reshape(N_EMBED, N_EMBED)
    wqkv = jnp.concatenate([wq_c, wk_c, wv_c], axis=-1).astype(jnp.bfloat16)
    w1_bf = w1.astype(jnp.bfloat16)
    w2_bf = w2.astype(jnp.bfloat16)

    x2d = x.reshape(BT, N_EMBED)                              # lane-dense (32, 128)

    def full(shape):
        # whole-array block, constant index map
        return pl.BlockSpec(shape, lambda *_: (0,) * len(shape))

    in_specs = [
        full((BT, N_EMBED)),                                  # x (whole batch, one step)
        full((1, N_EMBED)), full((1, N_EMBED)),               # attn_norm gamma, beta
        full((N_EMBED, 3 * N_EMBED)),                         # fused Wqkv (bf16)
        full((1, N_EMBED)), full((1, N_EMBED)),               # ffw_norm gamma, beta
        full((N_EMBED, FF_HIDDEN)), full((1, FF_HIDDEN)),     # ffw linear1 W (bf16), b
        full((FF_HIDDEN, N_EMBED)), full((1, N_EMBED)),       # ffw linear2 W (bf16), b
    ]
    out_specs = full((BT, N_EMBED))

    flops = (2 * BT * N_EMBED * 3 * N_EMBED                   # fused QKV
             + 2 * 2 * B * N_HEADS * T * T * HEAD_SIZE        # scores + PV
             + 2 * 2 * BT * N_EMBED * FF_HIDDEN)              # FFN
    bytes_accessed = (2 * BT * N_EMBED * 4                    # x in + out (f32)
                      + (N_EMBED * 3 * N_EMBED
                         + 2 * N_EMBED * FF_HIDDEN) * 2       # bf16 weights
                      + (4 * N_EMBED + FF_HIDDEN + N_EMBED) * 4)  # norms + biases
    cost = pl.CostEstimate(flops=flops,
                           transcendentals=B * N_HEADS * T * T + 4 * BT,
                           bytes_accessed=bytes_accessed)

    out2d = pl.pallas_call(
        encoder_kernel,
        out_shape=jax.ShapeDtypeStruct((BT, N_EMBED), jnp.float32),
        grid_spec=pltpu.PrefetchScalarGridSpec(
            num_scalar_prefetch=0,
            grid=(1,),
            in_specs=in_specs,
            out_specs=out_specs,
        ),
        compiler_params=pltpu.CompilerParams(dimension_semantics=("arbitrary",)),
        cost_estimate=cost,
    )(x2d, g1, b1, wqkv, g2, b2, w1_bf, fb1, w2_bf, fb2)

    return out2d.reshape(B, T, N_EMBED)


def encoder_reference(x, g1, b1, wq, wk, wv, g2, b2, w1, fb1, w2, fb2):
    """Pure-JAX f32 reference mirroring the PyTorch forward (eval mode)."""
    def ln(z, g, bta):
        mu = jnp.mean(z, axis=-1, keepdims=True)
        var = jnp.mean((z - mu) ** 2, axis=-1, keepdims=True)
        return (z - mu) / jnp.sqrt(var + LN_EPS) * g + bta

    h = ln(x, g1[0], b1[0])                                   # (B, T, C)
    scale = float(N_EMBED) ** -0.5
    heads = []
    for hd in range(N_HEADS):
        q = h @ wq[hd]
        k = h @ wk[hd]
        v = h @ wv[hd]
        s = jnp.einsum("btd,bsd->bts", q, k) * scale
        p = jax.nn.softmax(s, axis=-1)
        heads.append(jnp.einsum("bts,bsd->btd", p, v))
    x1 = x + jnp.concatenate(heads, axis=-1)
    h2 = ln(x1, g2[0], b2[0])
    ff = jnp.maximum(h2 @ w1 + fb1[0], 0.0) @ w2 + fb2[0]
    return x1 + ff


if __name__ == "__main__":
    key = jax.random.PRNGKey(0)
    ks = jax.random.split(key, 12)

    x = jax.random.normal(ks[0], (B, T, N_EMBED), dtype=jnp.float32)

    # deterministic synthetic parameters (shapes from the module __init__)
    g1 = 1.0 + 0.1 * jax.random.normal(ks[1], (1, N_EMBED), dtype=jnp.float32)
    b1 = 0.1 * jax.random.normal(ks[2], (1, N_EMBED), dtype=jnp.float32)
    wq = 0.05 * jax.random.normal(ks[3], (N_HEADS, N_EMBED, HEAD_SIZE), dtype=jnp.float32)
    wk = 0.05 * jax.random.normal(ks[4], (N_HEADS, N_EMBED, HEAD_SIZE), dtype=jnp.float32)
    wv = 0.05 * jax.random.normal(ks[5], (N_HEADS, N_EMBED, HEAD_SIZE), dtype=jnp.float32)
    g2 = 1.0 + 0.1 * jax.random.normal(ks[6], (1, N_EMBED), dtype=jnp.float32)
    b2 = 0.1 * jax.random.normal(ks[7], (1, N_EMBED), dtype=jnp.float32)
    w1 = 0.05 * jax.random.normal(ks[8], (N_EMBED, FF_HIDDEN), dtype=jnp.float32)
    fb1 = 0.05 * jax.random.normal(ks[9], (1, FF_HIDDEN), dtype=jnp.float32)
    w2 = 0.05 * jax.random.normal(ks[10], (FF_HIDDEN, N_EMBED), dtype=jnp.float32)
    fb2 = 0.05 * jax.random.normal(ks[11], (1, N_EMBED), dtype=jnp.float32)

    params = (g1, b1, wq, wk, wv, g2, b2, w1, fb1, w2, fb2)

    out = encoder_forward(x, *params)
    out = jax.block_until_ready(out)

    ref = encoder_reference(x, *params)
    assert out.shape == (B, T, N_EMBED), out.shape
    # bf16 matmul inputs (f32 accumulation) -> relaxed tolerance vs f32 reference
    max_err = float(jnp.max(jnp.abs(out - ref)))
    assert jnp.allclose(out, ref, atol=5e-2, rtol=5e-2), max_err

    print("KERNEL_OK")
</pallas_src>

<mosaic_0001>
module attributes {stable_mosaic.version = 11 : i64} {
  func.func @encoder_kernel(%arg0: i32, %arg1: memref<32x128xf32, #tpu.memory_space<vmem>>, %arg2: memref<1x128xf32, #tpu.memory_space<vmem>>, %arg3: memref<1x128xf32, #tpu.memory_space<vmem>>, %arg4: memref<128x384xbf16, #tpu.memory_space<vmem>>, %arg5: memref<1x128xf32, #tpu.memory_space<vmem>>, %arg6: memref<1x128xf32, #tpu.memory_space<vmem>>, %arg7: memref<128x512xbf16, #tpu.memory_space<vmem>>, %arg8: memref<1x512xf32, #tpu.memory_space<vmem>>, %arg9: memref<512x128xbf16, #tpu.memory_space<vmem>>, %arg10: memref<1x128xf32, #tpu.memory_space<vmem>>, %arg11: memref<32x128xf32, #tpu.memory_space<vmem>>) attributes {dimension_semantics = [#tpu.dimension_semantics<arbitrary>], iteration_bounds = array<i64: 1>, scalar_prefetch = 0 : i64, scratch_operands = 0 : i64, tpu.core_type = #tpu.core_type<tc>, window_params = [{pipeline_mode = #tpu.pipeline_mode<synchronous>, transform_indices = @transform_0, window_bounds = array<i64: 32, 128>}, {pipeline_mode = #tpu.pipeline_mode<synchronous>, transform_indices = @transform_1, window_bounds = array<i64: 1, 128>}, {pipeline_mode = #tpu.pipeline_mode<synchronous>, transform_indices = @transform_2, window_bounds = array<i64: 1, 128>}, {pipeline_mode = #tpu.pipeline_mode<synchronous>, transform_indices = @transform_3, window_bounds = array<i64: 128, 384>}, {pipeline_mode = #tpu.pipeline_mode<synchronous>, transform_indices = @transform_4, window_bounds = array<i64: 1, 128>}, {pipeline_mode = #tpu.pipeline_mode<synchronous>, transform_indices = @transform_5, window_bounds = array<i64: 1, 128>}, {pipeline_mode = #tpu.pipeline_mode<synchronous>, transform_indices = @transform_6, window_bounds = array<i64: 128, 512>}, {pipeline_mode = #tpu.pipeline_mode<synchronous>, transform_indices = @transform_7, window_bounds = array<i64: 1, 512>}, {pipeline_mode = #tpu.pipeline_mode<synchronous>, transform_indices = @transform_8, window_bounds = array<i64: 512, 128>}, {pipeline_mode = #tpu.pipeline_mode<synchronous>, transform_indices = @transform_9, window_bounds = array<i64: 1, 128>}, {pipeline_mode = #tpu.pipeline_mode<synchronous>, transform_indices = @transform_10, window_bounds = array<i64: 32, 128>}]} {
    %c0 = arith.constant 0 : index
    %c0_0 = arith.constant 0 : index
    %0 = vector.load %arg1[%c0, %c0_0] : memref<32x128xf32, #tpu.memory_space<vmem>>, vector<32x128xf32>
    %cst = arith.constant dense<0.000000e+00> : vector<32xf32>
    %1 = vector.multi_reduction <add>, %0, %cst [1] : vector<32x128xf32> to vector<32xf32>
    %2 = vector.shape_cast %1 : vector<32xf32> to vector<32x1xf32>
    %cst_1 = arith.constant 1.280000e+02 : f32
    %3 = vector.broadcast %cst_1 : f32 to vector<32x1xf32>
    %4 = arith.divf %2, %3 : vector<32x1xf32>
    %5 = vector.broadcast %4 : vector<32x1xf32> to vector<32x128xf32>
    %6 = arith.subf %0, %5 : vector<32x128xf32>
    %7 = arith.mulf %6, %6 : vector<32x128xf32>
    %cst_2 = arith.constant dense<0.000000e+00> : vector<32xf32>
    %8 = vector.multi_reduction <add>, %7, %cst_2 [1] : vector<32x128xf32> to vector<32xf32>
    %9 = vector.shape_cast %8 : vector<32xf32> to vector<32x1xf32>
    %cst_3 = arith.constant 1.280000e+02 : f32
    %10 = vector.broadcast %cst_3 : f32 to vector<32x1xf32>
    %11 = arith.divf %9, %10 : vector<32x1xf32>
    %12 = vector.broadcast %4 : vector<32x1xf32> to vector<32x128xf32>
    %13 = arith.subf %0, %12 : vector<32x128xf32>
    %cst_4 = arith.constant 9.99999974E-6 : f32
    %14 = vector.broadcast %cst_4 : f32 to vector<32x1xf32>
    %15 = arith.addf %11, %14 : vector<32x1xf32>
    %16 = math.rsqrt %15 : vector<32x1xf32>
    %17 = vector.broadcast %16 : vector<32x1xf32> to vector<32x128xf32>
    %18 = arith.mulf %13, %17 : vector<32x128xf32>
    %c0_5 = arith.constant 0 : index
    %c0_6 = arith.constant 0 : index
    %19 = vector.load %arg2[%c0_5, %c0_6] : memref<1x128xf32, #tpu.memory_space<vmem>>, vector<1x128xf32>
    %20 = vector.shape_cast %19 : vector<1x128xf32> to vector<128xf32>
    %21 = vector.shape_cast %20 : vector<128xf32> to vector<1x128xf32>
    %22 = vector.broadcast %21 : vector<1x128xf32> to vector<32x128xf32>
    %23 = arith.mulf %18, %22 : vector<32x128xf32>
    %c0_7 = arith.constant 0 : index
    %c0_8 = arith.constant 0 : index
    %24 = vector.load %arg3[%c0_7, %c0_8] : memref<1x128xf32, #tpu.memory_space<vmem>>, vector<1x128xf32>
    %25 = vector.shape_cast %24 : vector<1x128xf32> to vector<128xf32>
    %26 = vector.shape_cast %25 : vector<128xf32> to vector<1x128xf32>
    %27 = vector.broadcast %26 : vector<1x128xf32> to vector<32x128xf32>
    %28 = arith.addf %23, %27 : vector<32x128xf32>
    %29 = arith.truncf %28 : vector<32x128xf32> to vector<32x128xbf16>
    %c0_9 = arith.constant 0 : index
    %c0_10 = arith.constant 0 : index
    %30 = vector.load %arg4[%c0_9, %c0_10] : memref<128x384xbf16, #tpu.memory_space<vmem>>, vector<128x384xbf16>
    %cst_11 = arith.constant dense<0.000000e+00> : vector<32x384xf32>
    %31 = tpu.matmul %29, %30, %cst_11 {dimension_numbers = #tpu.dot_dimension_numbers<[1], [0], [0], [1], [0, 0, 1, 1], [], []>} : vector<32x128xbf16>, vector<128x384xbf16>, vector<32x384xf32> -> vector<32x384xf32>
    %32 = vector.extract_strided_slice %31 {offsets = [0, 0], sizes = [32, 128], strides = [1, 1]} : vector<32x384xf32> to vector<32x128xf32>
    %33 = arith.truncf %32 : vector<32x128xf32> to vector<32x128xbf16>
    %34 = vector.extract_strided_slice %31 {offsets = [0, 128], sizes = [32, 128], strides = [1, 1]} : vector<32x384xf32> to vector<32x128xf32>
    %35 = arith.truncf %34 : vector<32x128xf32> to vector<32x128xbf16>
    %36 = vector.extract_strided_slice %31 {offsets = [0, 256], sizes = [32, 128], strides = [1, 1]} : vector<32x384xf32> to vector<32x128xf32>
    %37 = arith.truncf %36 : vector<32x128xf32> to vector<32x128xbf16>
    %38 = vector.extract_strided_slice %33 {offsets = [0, 0], sizes = [16, 32], strides = [1, 1]} : vector<32x128xbf16> to vector<16x32xbf16>
    %39 = vector.extract_strided_slice %35 {offsets = [0, 0], sizes = [16, 32], strides = [1, 1]} : vector<32x128xbf16> to vector<16x32xbf16>
    %40 = vector.extract_strided_slice %37 {offsets = [0, 0], sizes = [16, 32], strides = [1, 1]} : vector<32x128xbf16> to vector<16x32xbf16>
    %cst_12 = arith.constant dense<0.000000e+00> : vector<16x16xf32>
    %41 = tpu.matmul %38, %39, %cst_12 {dimension_numbers = #tpu.dot_dimension_numbers<[1], [1], [0], [0], [0, 0, 1, 0], [], []>} : vector<16x32xbf16>, vector<16x32xbf16>, vector<16x16xf32> -> vector<16x16xf32>
    %cst_13 = arith.constant dense<0xFF800000> : vector<16xf32>
    %42 = vector.multi_reduction <maximumf>, %41, %cst_13 [1] : vector<16x16xf32> to vector<16xf32>
    %43 = vector.shape_cast %42 : vector<16xf32> to vector<16x1xf32>
    %44 = vector.broadcast %43 : vector<16x1xf32> to vector<16x16xf32>
    %45 = arith.subf %41, %44 : vector<16x16xf32>
    %46 = math.exp %45 : vector<16x16xf32>
    %cst_14 = arith.constant dense<0.000000e+00> : vector<16xf32>
    %47 = vector.multi_reduction <add>, %46, %cst_14 [1] : vector<16x16xf32> to vector<16xf32>
    %48 = vector.shape_cast %47 : vector<16xf32> to vector<16x1xf32>
    %49 = tpu.reciprocal %48 {approx = true} : vector<16x1xf32> -> vector<16x1xf32>
    %50 = vector.broadcast %49 : vector<16x1xf32> to vector<16x16xf32>
    %51 = arith.mulf %46, %50 : vector<16x16xf32>
    %52 = arith.truncf %51 : vector<16x16xf32> to vector<16x16xbf16>
    %cst_15 = arith.constant dense<0.000000e+00> : vector<16x32xf32>
    %53 = tpu.matmul %52, %40, %cst_15 {dimension_numbers = #tpu.dot_dimension_numbers<[1], [0], [0], [1], [0, 0, 1, 1], [], []>} : vector<16x16xbf16>, vector<16x32xbf16>, vector<16x32xf32> -> vector<16x32xf32>
    %54 = vector.extract_strided_slice %33 {offsets = [0, 32], sizes = [16, 32], strides = [1, 1]} : vector<32x128xbf16> to vector<16x32xbf16>
    %55 = vector.extract_strided_slice %35 {offsets = [0, 32], sizes = [16, 32], strides = [1, 1]} : vector<32x128xbf16> to vector<16x32xbf16>
    %56 = vector.extract_strided_slice %37 {offsets = [0, 32], sizes = [16, 32], strides = [1, 1]} : vector<32x128xbf16> to vector<16x32xbf16>
    %cst_16 = arith.constant dense<0.000000e+00> : vector<16x16xf32>
    %57 = tpu.matmul %54, %55, %cst_16 {dimension_numbers = #tpu.dot_dimension_numbers<[1], [1], [0], [0], [0, 0, 1, 0], [], []>} : vector<16x32xbf16>, vector<16x32xbf16>, vector<16x16xf32> -> vector<16x16xf32>
    %cst_17 = arith.constant dense<0xFF800000> : vector<16xf32>
    %58 = vector.multi_reduction <maximumf>, %57, %cst_17 [1] : vector<16x16xf32> to vector<16xf32>
    %59 = vector.shape_cast %58 : vector<16xf32> to vector<16x1xf32>
    %60 = vector.broadcast %59 : vector<16x1xf32> to vector<16x16xf32>
    %61 = arith.subf %57, %60 : vector<16x16xf32>
    %62 = math.exp %61 : vector<16x16xf32>
    %cst_18 = arith.constant dense<0.000000e+00> : vector<16xf32>
    %63 = vector.multi_reduction <add>, %62, %cst_18 [1] : vector<16x16xf32> to vector<16xf32>
    %64 = vector.shape_cast %63 : vector<16xf32> to vector<16x1xf32>
    %65 = tpu.reciprocal %64 {approx = true} : vector<16x1xf32> -> vector<16x1xf32>
    %66 = vector.broadcast %65 : vector<16x1xf32> to vector<16x16xf32>
    %67 = arith.mulf %62, %66 : vector<16x16xf32>
    %68 = arith.truncf %67 : vector<16x16xf32> to vector<16x16xbf16>
    %cst_19 = arith.constant dense<0.000000e+00> : vector<16x32xf32>
    %69 = tpu.matmul %68, %56, %cst_19 {dimension_numbers = #tpu.dot_dimension_numbers<[1], [0], [0], [1], [0, 0, 1, 1], [], []>} : vector<16x16xbf16>, vector<16x32xbf16>, vector<16x32xf32> -> vector<16x32xf32>
    %70 = vector.extract_strided_slice %33 {offsets = [0, 64], sizes = [16, 32], strides = [1, 1]} : vector<32x128xbf16> to vector<16x32xbf16>
    %71 = vector.extract_strided_slice %35 {offsets = [0, 64], sizes = [16, 32], strides = [1, 1]} : vector<32x128xbf16> to vector<16x32xbf16>
    %72 = vector.extract_strided_slice %37 {offsets = [0, 64], sizes = [16, 32], strides = [1, 1]} : vector<32x128xbf16> to vector<16x32xbf16>
    %cst_20 = arith.constant dense<0.000000e+00> : vector<16x16xf32>
    %73 = tpu.matmul %70, %71, %cst_20 {dimension_numbers = #tpu.dot_dimension_numbers<[1], [1], [0], [0], [0, 0, 1, 0], [], []>} : vector<16x32xbf16>, vector<16x32xbf16>, vector<16x16xf32> -> vector<16x16xf32>
    %cst_21 = arith.constant dense<0xFF800000> : vector<16xf32>
    %74 = vector.multi_reduction <maximumf>, %73, %cst_21 [1] : vector<16x16xf32> to vector<16xf32>
    %75 = vector.shape_cast %74 : vector<16xf32> to vector<16x1xf32>
    %76 = vector.broadcast %75 : vector<16x1xf32> to vector<16x16xf32>
    %77 = arith.subf %73, %76 : vector<16x16xf32>
    %78 = math.exp %77 : vector<16x16xf32>
    %cst_22 = arith.constant dense<0.000000e+00> : vector<16xf32>
    %79 = vector.multi_reduction <add>, %78, %cst_22 [1] : vector<16x16xf32> to vector<16xf32>
    %80 = vector.shape_cast %79 : vector<16xf32> to vector<16x1xf32>
    %81 = tpu.reciprocal %80 {approx = true} : vector<16x1xf32> -> vector<16x1xf32>
    %82 = vector.broadcast %81 : vector<16x1xf32> to vector<16x16xf32>
    %83 = arith.mulf %78, %82 : vector<16x16xf32>
    %84 = arith.truncf %83 : vector<16x16xf32> to vector<16x16xbf16>
    %cst_23 = arith.constant dense<0.000000e+00> : vector<16x32xf32>
    %85 = tpu.matmul %84, %72, %cst_23 {dimension_numbers = #tpu.dot_dimension_numbers<[1], [0], [0], [1], [0, 0, 1, 1], [], []>} : vector<16x16xbf16>, vector<16x32xbf16>, vector<16x32xf32> -> vector<16x32xf32>
    %86 = vector.extract_strided_slice %33 {offsets = [0, 96], sizes = [16, 32], strides = [1, 1]} : vector<32x128xbf16> to vector<16x32xbf16>
    %87 = vector.extract_strided_slice %35 {offsets = [0, 96], sizes = [16, 32], strides = [1, 1]} : vector<32x128xbf16> to vector<16x32xbf16>
    %88 = vector.extract_strided_slice %37 {offsets = [0, 96], sizes = [16, 32], strides = [1, 1]} : vector<32x128xbf16> to vector<16x32xbf16>
    %cst_24 = arith.constant dense<0.000000e+00> : vector<16x16xf32>
    %89 = tpu.matmul %86, %87, %cst_24 {dimension_numbers = #tpu.dot_dimension_numbers<[1], [1], [0], [0], [0, 0, 1, 0], [], []>} : vector<16x32xbf16>, vector<16x32xbf16>, vector<16x16xf32> -> vector<16x16xf32>
    %cst_25 = arith.constant dense<0xFF800000> : vector<16xf32>
    %90 = vector.multi_reduction <maximumf>, %89, %cst_25 [1] : vector<16x16xf32> to vector<16xf32>
    %91 = vector.shape_cast %90 : vector<16xf32> to vector<16x1xf32>
    %92 = vector.broadcast %91 : vector<16x1xf32> to vector<16x16xf32>
    %93 = arith.subf %89, %92 : vector<16x16xf32>
    %94 = math.exp %93 : vector<16x16xf32>
    %cst_26 = arith.constant dense<0.000000e+00> : vector<16xf32>
    %95 = vector.multi_reduction <add>, %94, %cst_26 [1] : vector<16x16xf32> to vector<16xf32>
    %96 = vector.shape_cast %95 : vector<16xf32> to vector<16x1xf32>
    %97 = tpu.reciprocal %96 {approx = true} : vector<16x1xf32> -> vector<16x1xf32>
    %98 = vector.broadcast %97 : vector<16x1xf32> to vector<16x16xf32>
    %99 = arith.mulf %94, %98 : vector<16x16xf32>
    %100 = arith.truncf %99 : vector<16x16xf32> to vector<16x16xbf16>
    %cst_27 = arith.constant dense<0.000000e+00> : vector<16x32xf32>
    %101 = tpu.matmul %100, %88, %cst_27 {dimension_numbers = #tpu.dot_dimension_numbers<[1], [0], [0], [1], [0, 0, 1, 1], [], []>} : vector<16x16xbf16>, vector<16x32xbf16>, vector<16x32xf32> -> vector<16x32xf32>
    %102 = tpu.concatenate %53, %69, %85, %101 in 1 : vector<16x32xf32>, vector<16x32xf32>, vector<16x32xf32>, vector<16x32xf32> -> vector<16x128xf32>
    %103 = vector.extract_strided_slice %33 {offsets = [16, 0], sizes = [16, 32], strides = [1, 1]} : vector<32x128xbf16> to vector<16x32xbf16>
    %104 = vector.extract_strided_slice %35 {offsets = [16, 0], sizes = [16, 32], strides = [1, 1]} : vector<32x128xbf16> to vector<16x32xbf16>
    %105 = vector.extract_strided_slice %37 {offsets = [16, 0], sizes = [16, 32], strides = [1, 1]} : vector<32x128xbf16> to vector<16x32xbf16>
    %cst_28 = arith.constant dense<0.000000e+00> : vector<16x16xf32>
    %106 = tpu.matmul %103, %104, %cst_28 {dimension_numbers = #tpu.dot_dimension_numbers<[1], [1], [0], [0], [0, 0, 1, 0], [], []>} : vector<16x32xbf16>, vector<16x32xbf16>, vector<16x16xf32> -> vector<16x16xf32>
    %cst_29 = arith.constant dense<0xFF800000> : vector<16xf32>
    %107 = vector.multi_reduction <maximumf>, %106, %cst_29 [1] : vector<16x16xf32> to vector<16xf32>
    %108 = vector.shape_cast %107 : vector<16xf32> to vector<16x1xf32>
    %109 = vector.broadcast %108 : vector<16x1xf32> to vector<16x16xf32>
    %110 = arith.subf %106, %109 : vector<16x16xf32>
    %111 = math.exp %110 : vector<16x16xf32>
    %cst_30 = arith.constant dense<0.000000e+00> : vector<16xf32>
    %112 = vector.multi_reduction <add>, %111, %cst_30 [1] : vector<16x16xf32> to vector<16xf32>
    %113 = vector.shape_cast %112 : vector<16xf32> to vector<16x1xf32>
    %114 = tpu.reciprocal %113 {approx = true} : vector<16x1xf32> -> vector<16x1xf32>
    %115 = vector.broadcast %114 : vector<16x1xf32> to vector<16x16xf32>
    %116 = arith.mulf %111, %115 : vector<16x16xf32>
    %117 = arith.truncf %116 : vector<16x16xf32> to vector<16x16xbf16>
    %cst_31 = arith.constant dense<0.000000e+00> : vector<16x32xf32>
    %118 = tpu.matmul %117, %105, %cst_31 {dimension_numbers = #tpu.dot_dimension_numbers<[1], [0], [0], [1], [0, 0, 1, 1], [], []>} : vector<16x16xbf16>, vector<16x32xbf16>, vector<16x32xf32> -> vector<16x32xf32>
    %119 = vector.extract_strided_slice %33 {offsets = [16, 32], sizes = [16, 32], strides = [1, 1]} : vector<32x128xbf16> to vector<16x32xbf16>
    %120 = vector.extract_strided_slice %35 {offsets = [16, 32], sizes = [16, 32], strides = [1, 1]} : vector<32x128xbf16> to vector<16x32xbf16>
    %121 = vector.extract_strided_slice %37 {offsets = [16, 32], sizes = [16, 32], strides = [1, 1]} : vector<32x128xbf16> to vector<16x32xbf16>
    %cst_32 = arith.constant dense<0.000000e+00> : vector<16x16xf32>
    %122 = tpu.matmul %119, %120, %cst_32 {dimension_numbers = #tpu.dot_dimension_numbers<[1], [1], [0], [0], [0, 0, 1, 0], [], []>} : vector<16x32xbf16>, vector<16x32xbf16>, vector<16x16xf32> -> vector<16x16xf32>
    %cst_33 = arith.constant dense<0xFF800000> : vector<16xf32>
    %123 = vector.multi_reduction <maximumf>, %122, %cst_33 [1] : vector<16x16xf32> to vector<16xf32>
    %124 = vector.shape_cast %123 : vector<16xf32> to vector<16x1xf32>
    %125 = vector.broadcast %124 : vector<16x1xf32> to vector<16x16xf32>
    %126 = arith.subf %122, %125 : vector<16x16xf32>
    %127 = math.exp %126 : vector<16x16xf32>
    %cst_34 = arith.constant dense<0.000000e+00> : vector<16xf32>
    %128 = vector.multi_reduction <add>, %127, %cst_34 [1] : vector<16x16xf32> to vector<16xf32>
    %129 = vector.shape_cast %128 : vector<16xf32> to vector<16x1xf32>
    %130 = tpu.reciprocal %129 {approx = true} : vector<16x1xf32> -> vector<16x1xf32>
    %131 = vector.broadcast %130 : vector<16x1xf32> to vector<16x16xf32>
    %132 = arith.mulf %127, %131 : vector<16x16xf32>
    %133 = arith.truncf %132 : vector<16x16xf32> to vector<16x16xbf16>
    %cst_35 = arith.constant dense<0.000000e+00> : vector<16x32xf32>
    %134 = tpu.matmul %133, %121, %cst_35 {dimension_numbers = #tpu.dot_dimension_numbers<[1], [0], [0], [1], [0, 0, 1, 1], [], []>} : vector<16x16xbf16>, vector<16x32xbf16>, vector<16x32xf32> -> vector<16x32xf32>
    %135 = vector.extract_strided_slice %33 {offsets = [16, 64], sizes = [16, 32], strides = [1, 1]} : vector<32x128xbf16> to vector<16x32xbf16>
    %136 = vector.extract_strided_slice %35 {offsets = [16, 64], sizes = [16, 32], strides = [1, 1]} : vector<32x128xbf16> to vector<16x32xbf16>
    %137 = vector.extract_strided_slice %37 {offsets = [16, 64], sizes = [16, 32], strides = [1, 1]} : vector<32x128xbf16> to vector<16x32xbf16>
    %cst_36 = arith.constant dense<0.000000e+00> : vector<16x16xf32>
    %138 = tpu.matmul %135, %136, %cst_36 {dimension_numbers = #tpu.dot_dimension_numbers<[1], [1], [0], [0], [0, 0, 1, 0], [], []>} : vector<16x32xbf16>, vector<16x32xbf16>, vector<16x16xf32> -> vector<16x16xf32>
    %cst_37 = arith.constant dense<0xFF800000> : vector<16xf32>
    %139 = vector.multi_reduction <maximumf>, %138, %cst_37 [1] : vector<16x16xf32> to vector<16xf32>
    %140 = vector.shape_cast %139 : vector<16xf32> to vector<16x1xf32>
    %141 = vector.broadcast %140 : vector<16x1xf32> to vector<16x16xf32>
    %142 = arith.subf %138, %141 : vector<16x16xf32>
    %143 = math.exp %142 : vector<16x16xf32>
    %cst_38 = arith.constant dense<0.000000e+00> : vector<16xf32>
    %144 = vector.multi_reduction <add>, %143, %cst_38 [1] : vector<16x16xf32> to vector<16xf32>
    %145 = vector.shape_cast %144 : vector<16xf32> to vector<16x1xf32>
    %146 = tpu.reciprocal %145 {approx = true} : vector<16x1xf32> -> vector<16x1xf32>
    %147 = vector.broadcast %146 : vector<16x1xf32> to vector<16x16xf32>
    %148 = arith.mulf %143, %147 : vector<16x16xf32>
    %149 = arith.truncf %148 : vector<16x16xf32> to vector<16x16xbf16>
    %cst_39 = arith.constant dense<0.000000e+00> : vector<16x32xf32>
    %150 = tpu.matmul %149, %137, %cst_39 {dimension_numbers = #tpu.dot_dimension_numbers<[1], [0], [0], [1], [0, 0, 1, 1], [], []>} : vector<16x16xbf16>, vector<16x32xbf16>, vector<16x32xf32> -> vector<16x32xf32>
    %151 = vector.extract_strided_slice %33 {offsets = [16, 96], sizes = [16, 32], strides = [1, 1]} : vector<32x128xbf16> to vector<16x32xbf16>
    %152 = vector.extract_strided_slice %35 {offsets = [16, 96], sizes = [16, 32], strides = [1, 1]} : vector<32x128xbf16> to vector<16x32xbf16>
    %153 = vector.extract_strided_slice %37 {offsets = [16, 96], sizes = [16, 32], strides = [1, 1]} : vector<32x128xbf16> to vector<16x32xbf16>
    %cst_40 = arith.constant dense<0.000000e+00> : vector<16x16xf32>
    %154 = tpu.matmul %151, %152, %cst_40 {dimension_numbers = #tpu.dot_dimension_numbers<[1], [1], [0], [0], [0, 0, 1, 0], [], []>} : vector<16x32xbf16>, vector<16x32xbf16>, vector<16x16xf32> -> vector<16x16xf32>
    %cst_41 = arith.constant dense<0xFF800000> : vector<16xf32>
    %155 = vector.multi_reduction <maximumf>, %154, %cst_41 [1] : vector<16x16xf32> to vector<16xf32>
    %156 = vector.shape_cast %155 : vector<16xf32> to vector<16x1xf32>
    %157 = vector.broadcast %156 : vector<16x1xf32> to vector<16x16xf32>
    %158 = arith.subf %154, %157 : vector<16x16xf32>
    %159 = math.exp %158 : vector<16x16xf32>
    %cst_42 = arith.constant dense<0.000000e+00> : vector<16xf32>
    %160 = vector.multi_reduction <add>, %159, %cst_42 [1] : vector<16x16xf32> to vector<16xf32>
    %161 = vector.shape_cast %160 : vector<16xf32> to vector<16x1xf32>
    %162 = tpu.reciprocal %161 {approx = true} : vector<16x1xf32> -> vector<16x1xf32>
    %163 = vector.broadcast %162 : vector<16x1xf32> to vector<16x16xf32>
    %164 = arith.mulf %159, %163 : vector<16x16xf32>
    %165 = arith.truncf %164 : vector<16x16xf32> to vector<16x16xbf16>
    %cst_43 = arith.constant dense<0.000000e+00> : vector<16x32xf32>
    %166 = tpu.matmul %165, %153, %cst_43 {dimension_numbers = #tpu.dot_dimension_numbers<[1], [0], [0], [1], [0, 0, 1, 1], [], []>} : vector<16x16xbf16>, vector<16x32xbf16>, vector<16x32xf32> -> vector<16x32xf32>
    %167 = tpu.concatenate %118, %134, %150, %166 in 1 : vector<16x32xf32>, vector<16x32xf32>, vector<16x32xf32>, vector<16x32xf32> -> vector<16x128xf32>
    %168 = tpu.concatenate %102, %167 in 0 : vector<16x128xf32>, vector<16x128xf32> -> vector<32x128xf32>
    %169 = arith.addf %0, %168 : vector<32x128xf32>
    %cst_44 = arith.constant dense<0.000000e+00> : vector<32xf32>
    %170 = vector.multi_reduction <add>, %169, %cst_44 [1] : vector<32x128xf32> to vector<32xf32>
    %171 = vector.shape_cast %170 : vector<32xf32> to vector<32x1xf32>
    %cst_45 = arith.constant 1.280000e+02 : f32
    %172 = vector.broadcast %cst_45 : f32 to vector<32x1xf32>
    %173 = arith.divf %171, %172 : vector<32x1xf32>
    %174 = vector.broadcast %173 : vector<32x1xf32> to vector<32x128xf32>
    %175 = arith.subf %169, %174 : vector<32x128xf32>
    %176 = arith.mulf %175, %175 : vector<32x128xf32>
    %cst_46 = arith.constant dense<0.000000e+00> : vector<32xf32>
    %177 = vector.multi_reduction <add>, %176, %cst_46 [1] : vector<32x128xf32> to vector<32xf32>
    %178 = vector.shape_cast %177 : vector<32xf32> to vector<32x1xf32>
    %cst_47 = arith.constant 1.280000e+02 : f32
    %179 = vector.broadcast %cst_47 : f32 to vector<32x1xf32>
    %180 = arith.divf %178, %179 : vector<32x1xf32>
    %181 = vector.broadcast %173 : vector<32x1xf32> to vector<32x128xf32>
    %182 = arith.subf %169, %181 : vector<32x128xf32>
    %cst_48 = arith.constant 9.99999974E-6 : f32
    %183 = vector.broadcast %cst_48 : f32 to vector<32x1xf32>
    %184 = arith.addf %180, %183 : vector<32x1xf32>
    %185 = math.rsqrt %184 : vector<32x1xf32>
    %186 = vector.broadcast %185 : vector<32x1xf32> to vector<32x128xf32>
    %187 = arith.mulf %182, %186 : vector<32x128xf32>
    %c0_49 = arith.constant 0 : index
    %c0_50 = arith.constant 0 : index
    %188 = vector.load %arg5[%c0_49, %c0_50] : memref<1x128xf32, #tpu.memory_space<vmem>>, vector<1x128xf32>
    %189 = vector.shape_cast %188 : vector<1x128xf32> to vector<128xf32>
    %190 = vector.shape_cast %189 : vector<128xf32> to vector<1x128xf32>
    %191 = vector.broadcast %190 : vector<1x128xf32> to vector<32x128xf32>
    %192 = arith.mulf %187, %191 : vector<32x128xf32>
    %c0_51 = arith.constant 0 : index
    %c0_52 = arith.constant 0 : index
    %193 = vector.load %arg6[%c0_51, %c0_52] : memref<1x128xf32, #tpu.memory_space<vmem>>, vector<1x128xf32>
    %194 = vector.shape_cast %193 : vector<1x128xf32> to vector<128xf32>
    %195 = vector.shape_cast %194 : vector<128xf32> to vector<1x128xf32>
    %196 = vector.broadcast %195 : vector<1x128xf32> to vector<32x128xf32>
    %197 = arith.addf %192, %196 : vector<32x128xf32>
    %198 = arith.truncf %197 : vector<32x128xf32> to vector<32x128xbf16>
    %c0_53 = arith.constant 0 : index
    %c0_54 = arith.constant 0 : index
    %199 = vector.load %arg7[%c0_53, %c0_54] : memref<128x512xbf16, #tpu.memory_space<vmem>>, vector<128x512xbf16>
    %cst_55 = arith.constant dense<0.000000e+00> : vector<32x512xf32>
    %200 = tpu.matmul %198, %199, %cst_55 {dimension_numbers = #tpu.dot_dimension_numbers<[1], [0], [0], [1], [0, 0, 1, 1], [], []>} : vector<32x128xbf16>, vector<128x512xbf16>, vector<32x512xf32> -> vector<32x512xf32>
    %c0_56 = arith.constant 0 : index
    %c0_57 = arith.constant 0 : index
    %201 = vector.load %arg8[%c0_56, %c0_57] : memref<1x512xf32, #tpu.memory_space<vmem>>, vector<1x512xf32>
    %202 = vector.shape_cast %201 : vector<1x512xf32> to vector<512xf32>
    %203 = vector.shape_cast %202 : vector<512xf32> to vector<1x512xf32>
    %204 = vector.broadcast %203 : vector<1x512xf32> to vector<32x512xf32>
    %205 = arith.addf %200, %204 : vector<32x512xf32>
    %cst_58 = arith.constant 0.000000e+00 : f32
    %206 = vector.broadcast %cst_58 : f32 to vector<32x512xf32>
    %207 = arith.maximumf %205, %206 : vector<32x512xf32>
    %208 = arith.truncf %207 : vector<32x512xf32> to vector<32x512xbf16>
    %c0_59 = arith.constant 0 : index
    %c0_60 = arith.constant 0 : index
    %209 = vector.load %arg9[%c0_59, %c0_60] : memref<512x128xbf16, #tpu.memory_space<vmem>>, vector<512x128xbf16>
    %cst_61 = arith.constant dense<0.000000e+00> : vector<32x128xf32>
    %210 = tpu.matmul %208, %209, %cst_61 {dimension_numbers = #tpu.dot_dimension_numbers<[1], [0], [0], [1], [0, 0, 1, 1], [], []>} : vector<32x512xbf16>, vector<512x128xbf16>, vector<32x128xf32> -> vector<32x128xf32>
    %c0_62 = arith.constant 0 : index
    %c0_63 = arith.constant 0 : index
    %211 = vector.load %arg10[%c0_62, %c0_63] : memref<1x128xf32, #tpu.memory_space<vmem>>, vector<1x128xf32>
    %212 = vector.shape_cast %211 : vector<1x128xf32> to vector<128xf32>
    %213 = vector.shape_cast %212 : vector<128xf32> to vector<1x128xf32>
    %214 = vector.broadcast %213 : vector<1x128xf32> to vector<32x128xf32>
    %215 = arith.addf %210, %214 : vector<32x128xf32>
    %216 = arith.addf %169, %215 : vector<32x128xf32>
    %c0_64 = arith.constant 0 : index
    %c0_65 = arith.constant 0 : index
    %217 = vector.load %arg11[%c0_64, %c0_65] : memref<32x128xf32, #tpu.memory_space<vmem>>, vector<32x128xf32>
    tpu.vector_store %arg11[%c0_64, %c0_65], %216 {strides = array<i32>} : memref<32x128xf32, #tpu.memory_space<vmem>>, vector<32x128xf32>,
    return
  }
  func.func @transform_0(%arg0: i32) -> (i32, i32) {
    %c0_i32 = arith.constant 0 : i32
    %c0_i32_0 = arith.constant 0 : i32
    %c0_i32_1 = arith.constant 0 : i32
    return %c0_i32, %c0_i32_0 : i32, i32
  }
  func.func @transform_1(%arg0: i32) -> (i32, i32) {
    %c0_i32 = arith.constant 0 : i32
    %c0_i32_0 = arith.constant 0 : i32
    %c0_i32_1 = arith.constant 0 : i32
    return %c0_i32, %c0_i32_0 : i32, i32
  }
  func.func @transform_2(%arg0: i32) -> (i32, i32) {
    %c0_i32 = arith.constant 0 : i32
    %c0_i32_0 = arith.constant 0 : i32
    %c0_i32_1 = arith.constant 0 : i32
    return %c0_i32, %c0_i32_0 : i32, i32
  }
  func.func @transform_3(%arg0: i32) -> (i32, i32) {
    %c0_i32 = arith.constant 0 : i32
    %c0_i32_0 = arith.constant 0 : i32
    %c0_i32_1 = arith.constant 0 : i32
    return %c0_i32, %c0_i32_0 : i32, i32
  }
  func.func @transform_4(%arg0: i32) -> (i32, i32) {
    %c0_i32 = arith.constant 0 : i32
    %c0_i32_0 = arith.constant 0 : i32
    %c0_i32_1 = arith.constant 0 : i32
    return %c0_i32, %c0_i32_0 : i32, i32
  }
  func.func @transform_5(%arg0: i32) -> (i32, i32) {
    %c0_i32 = arith.constant 0 : i32
    %c0_i32_0 = arith.constant 0 : i32
    %c0_i32_1 = arith.constant 0 : i32
    return %c0_i32, %c0_i32_0 : i32, i32
  }
  func.func @transform_6(%arg0: i32) -> (i32, i32) {
    %c0_i32 = arith.constant 0 : i32
    %c0_i32_0 = arith.constant 0 : i32
    %c0_i32_1 = arith.constant 0 : i32
    return %c0_i32, %c0_i32_0 : i32, i32
  }
  func.func @transform_7(%arg0: i32) -> (i32, i32) {
    %c0_i32 = arith.constant 0 : i32
    %c0_i32_0 = arith.constant 0 : i32
    %c0_i32_1 = arith.constant 0 : i32
    return %c0_i32, %c0_i32_0 : i32, i32
  }
  func.func @transform_8(%arg0: i32) -> (i32, i32) {
    %c0_i32 = arith.constant 0 : i32
    %c0_i32_0 = arith.constant 0 : i32
    %c0_i32_1 = arith.constant 0 : i32
    return %c0_i32, %c0_i32_0 : i32, i32
  }
  func.func @transform_9(%arg0: i32) -> (i32, i32) {
    %c0_i32 = arith.constant 0 : i32
    %c0_i32_0 = arith.constant 0 : i32
    %c0_i32_1 = arith.constant 0 : i32
    return %c0_i32, %c0_i32_0 : i32, i32
  }
  func.func @transform_10(%arg0: i32) -> (i32, i32) {
    %c0_i32 = arith.constant 0 : i32
    %c0_i32_0 = arith.constant 0 : i32
    %c0_i32_1 = arith.constant 0 : i32
    return %c0_i32, %c0_i32_0 : i32, i32
  }
}

</mosaic_0001>

<bundles_post_ra>
// kernel: encoder_forward.1
= control target key start
LH: loop header
LB: loop body
LE: loop exit
PB: predicated region body
PF: predicated region fallthrough
CT: control target
= control target key end

     0   :  { %s3470_s0 = inlined_call_operand.vmem [shape: f32[32,128], index: 0, kind: input, shape index: {}]   ;;  %s3471_s1 = inlined_call_operand.vmem [shape: f32[1,128], index: 1, kind: input, shape index: {}]   ;;  %s3472_s2 = inlined_call_operand.vmem [shape: f32[1,128], index: 2, kind: input, shape index: {}]   ;;  %s3473_s3 = inlined_call_operand.vmem [shape: bf16[128,384], index: 3, kind: input, shape index: {}]   ;;  %s3474_s4 = inlined_call_operand.vmem [shape: f32[1,128], index: 4, kind: input, shape index: {}]   ;;  %s3475_s5 = inlined_call_operand.vmem [shape: f32[1,128], index: 5, kind: input, shape index: {}]   ;;  %s3476_s6 = inlined_call_operand.vmem [shape: bf16[128,512], index: 6, kind: input, shape index: {}]   ;;  %s3477_s7 = inlined_call_operand.vmem [shape: f32[1,512], index: 7, kind: input, shape index: {}]   ;;  %s3478_s8 = inlined_call_operand.vmem [shape: bf16[512,128], index: 8, kind: input, shape index: {}]   ;;  %s3479_s9 = inlined_call_operand.vmem [shape: f32[1,128], index: 9, kind: input, shape index: {}]   ;;  %s3480_s10 = inlined_call_operand.hbm [shape: f32[32,128], index: 10, kind: output, shape index: {}]  }
   0x1   :  { %v37_v0 = vld [vmem:[%s3470_s0] sm:$0xff]  ;;  %v39_v1 = vld [vmem:[%s3470_s0 + $0x10] sm:$0xff]  ;;  %v38_v2 = vld [vmem:[%s3470_s0 + $0x8] sm:$0xff] }
   0x2   :  { %41 = vadd.xlane.f32.xlu0 %v37_v0  ;;  %45 = vadd.xlane.f32.xlu1 %v39_v1  ;;  %v40_v3 = vld [vmem:[%s3470_s0 + $0x18] sm:$0xff]  ;;  %v2537_v5 = vld [vmem:[%s3473_s3 + $0xa8] ss:$12 sps:$4 sm:$0xff]  }
   0x3   :  { %v2535_v4 = vld [vmem:[%s3473_s3 + $0xac] ss:$12 sps:$4 sm:$0xff]  }
   0x4   :  { %270 = vmatprep.subr.bf16.mxu0 %v2535_v4 }
   0x5   :  { %271 = vmatpush1.bf16.msra.mxu0 %v2537_v5 }
   0x6   :  { %43 = vadd.xlane.f32.xlu0 %v38_v2  ;;  %47 = vadd.xlane.f32.xlu1 %v40_v3 }
   0x7   :  { %15 = vsyncpa [#allocation3], 0  ;;  %v2538_v22 = vld [vmem:[%s3473_s3 + $0x94] ss:$12 sps:$4 sm:$0xff]   ;;  %v2540_v23 = vld [vmem:[%s3473_s3 + $0xb0] ss:$12 sps:$4 sm:$0xff]  }
   0x8   :  { %v2541_v24 = vld [vmem:[%s3473_s3 + $0x90] ss:$12 sps:$4 sm:$0xff]   ;;  %272 = vmatprep.subr.bf16.mxu0 %v2538_v22  ;;  %2410 = vmatprep.subr.bf16.mxu1 %v2540_v23  ;;  %v2544_v26 = vld [vmem:[%s3473_s3 + $0x98] ss:$12 sps:$4 sm:$0xff]   ;;  %v2548_v29 = vld [vmem:[%s3473_s3 + $0x80] ss:$12 sps:$4 sm:$0xff]  }
   0x9   :  { %273 = vmatpush1.bf16.msra.mxu0 %v2541_v24  ;;  %2411 = vmatpush3.bf16.msra.mxu1 %v2540_v23  ;;  %v2542_v25 = vld [vmem:[%s3473_s3 + $0x7c] ss:$12 sps:$4 sm:$0xff]   ;;  %v2545_v27 = vld [vmem:[%s3473_s3 + $0x78] ss:$12 sps:$4 sm:$0xff]   ;;  %v2549_v30 = vld [vmem:[%s3473_s3 + $0x60] ss:$12 sps:$4 sm:$0xff]  }
   0xa   :  { %274 = vmatprep.subr.bf16.mxu0 %v2542_v25  ;;  %2412 = vmatprep.subr.bf16.mxu1 %v2544_v26  ;;  %v2546_v28 = vld [vmem:[%s3473_s3 + $0x64] ss:$12 sps:$4 sm:$0xff]   ;;  %v2550_v31 = vld [vmem:[%s3473_s3 + $0x4c] ss:$12 sps:$4 sm:$0xff]   ;;  %v2552_v32 = vld [vmem:[%s3473_s3 + $0x68] ss:$12 sps:$4 sm:$0xff]  }
   0xb   :  { %v2553_v33 = vld [vmem:[%s3473_s3 + $0x48] ss:$12 sps:$4 sm:$0xff]   ;;  %v2556_v35 = vld [vmem:[%s3473_s3 + $0x50] ss:$12 sps:$4 sm:$0xff]   ;;  %v2560_v38 = vld [vmem:[%s3473_s3 + $0x38] ss:$12 sps:$4 sm:$0xff]  }
   0xc   :  { %v2554_v34 = vld [vmem:[%s3473_s3 + $0x34] ss:$12 sps:$4 sm:$0xff]   ;;  %v2557_v36 = vld [vmem:[%s3473_s3 + $0x30] ss:$12 sps:$4 sm:$0xff]   ;;  %v2753_v39 = vmov 0   ;;  %vm2755_vm0 = vmmov 0  }
   0xd   :  { %275 = vmatpush1.bf16.msra.mxu0 %v2545_v27  ;;  %2413 = vmatpush3.bf16.msra.mxu1 %v2544_v26  ;;  %v2558_v37 = vld [vmem:[%s3473_s3 + $0x1c] ss:$12 sps:$4 sm:$0xff]   ;;  %v2561_v40 = vld [vmem:[%s3473_s3 + $0x18] ss:$12 sps:$4 sm:$0xff]   ;;  %v2564_v42 = vld [vmem:[%s3473_s3 + $0x20] ss:$12 sps:$4 sm:$0xff]  }
   0xe   :  { %276 = vmatprep.subr.bf16.mxu0 %v2546_v28  ;;  %2414 = vmatprep.subr.bf16.mxu1 %v2548_v29  ;;  %v2562_v41 = vld [vmem:[%s3473_s3 + $0x4] ss:$12 sps:$4 sm:$0xff]   ;;  %v2565_v43 = vld [vmem:[%s3473_s3] ss:$12 sps:$4 sm:$0xff]   ;;  %v2566_v44 = vld [vmem:[%s3473_s3 + $0x8] ss:$12 sps:$4 sm:$0xff]  }
   0xf   :  { %302 = vmatprep.mubr.bf16.mxu0 %v2753_v39  ;;  %v2203_v59 = vld [vmem:[%s3471_s1] ss:$0 sm:$0xff]  ;;  %vm378_vm1 = vcmask 261120   ;;  %s2756_s1 = smov 96   ;;  %s2758_s12 = smov 32   ;;  %vm426_vm2 = vcmask 130048  }
  0x10   :  { %vm886_vm3 = vcmask 523264   ;;  %vm889_vm4 = vcmask 785408  }
  0x11   :  { %277 = vmatpush1.bf16.msra.mxu0 %v2549_v30  ;;  %2415 = vmatpush3.bf16.msra.mxu1 %v2548_v29 }
  0x12   :  { %278 = vmatprep.subr.bf16.mxu0 %v2550_v31  ;;  %2416 = vmatprep.subr.bf16.mxu1 %v2552_v32 }
  0x15   :  { %279 = vmatpush1.bf16.msra.mxu0 %v2553_v33  ;;  %2417 = vmatpush3.bf16.msra.mxu1 %v2552_v32 }
  0x16   :  { %280 = vmatprep.subr.bf16.mxu0 %v2554_v34  ;;  %2418 = vmatprep.subr.bf16.mxu1 %v2556_v35 }
  0x19   :  { %281 = vmatpush1.bf16.msra.mxu0 %v2557_v36  ;;  %2419 = vmatpush3.bf16.msra.mxu1 %v2556_v35 }
  0x1a   :  { %282 = vmatprep.subr.bf16.mxu0 %v2558_v37  ;;  %2420 = vmatprep.subr.bf16.mxu1 %v2560_v38 }
  0x1d   :  { %283 = vmatpush1.bf16.msra.mxu0 %v2561_v40  ;;  %2421 = vmatpush3.bf16.msra.mxu1 %v2560_v38 }
  0x1e   :  { %284 = vmatprep.subr.bf16.mxu0 %v2562_v41  ;;  %2422 = vmatprep.subr.bf16.mxu1 %v2564_v42 }
  0x21   :  { %285 = vmatpush1.bf16.msra.mxu0 %v2565_v43  ;;  %2423 = vmatpush3.bf16.msra.mxu1 %v2564_v42 }
  0x22   :  { %2424 = vmatprep.subr.bf16.mxu1 %v2566_v44 }
  0x25   :  { %2425 = vmatpush3.bf16.msra.mxu1 %v2566_v44 }
  0x8b   :  { %v42_v6 = vpop.xlane.xlu0 %41  ;;  %v46_v7 = vpop.xlane.xlu1 %45 }
  0x8c   :  { %v50_v8 = vmul.f32 0.0078125, %v42_v6  ;;  %v52_v9 = vmul.f32 0.0078125, %v46_v7 }
  0x8e   :  { %v2835_v10 = vsub.f32 %v37_v0, %v50_v8  ;;  %v2837_v11 = vsub.f32 %v39_v1, %v52_v9  ;;  %v2204_v0 = vld [vmem:[%s3472_s2] ss:$0 sm:$0xff]  ;;  %s2757_s2 = smov 64  }
  0x8f   :  { %v44_v12 = vpop.xlane.xlu0 %43  ;;  %v48_v13 = vpop.xlane.xlu1 %47 }
  0x90   :  { %v51_v14 = vmul.f32 0.0078125, %v44_v12  ;;  %v58_v15 = vmul.f32 %v2835_v10, %v2835_v10  ;;  %v53_v16 = vmul.f32 0.0078125, %v48_v13  ;;  %v60_v19 = vmul.f32 %v2837_v11, %v2837_v11 }
  0x92   :  { %v2841_v17 = vsub.f32 %v38_v2, %v51_v14  ;;  %62 = vadd.xlane.f32.xlu0 %v58_v15  ;;  %v2843_v18 = vsub.f32 %v40_v3, %v53_v16  ;;  %v2754_v14 = vmov 0.0  }
  0x93   :  { %2430 = vmatprep.subr.bf16.mxu1 %v2754_v14  ;;  %2436 = vmatprep.subr.bf16.mxu0 %v2754_v14 }
  0x94   :  { %v59_v20 = vmul.f32 %v2841_v17, %v2841_v17  ;;  %v61_v21 = vmul.f32 %v2843_v18, %v2843_v18 }
  0x96   :  { %66 = vadd.xlane.f32.xlu0 %v60_v19  ;;  %64 = vadd.xlane.f32.xlu1 %v59_v20 }
  0x9a   :  { %68 = vadd.xlane.f32.xlu1 %v61_v21 }
 0x11b   :  { %v63_v45 = vpop.xlane.xlu0 %62 }
 0x11c   :  { %v70_v46 = vmul.f32 0.0078125, %v63_v45 }
 0x11e   :  { %v74_v47 = vadd.f32 1e-05, %v70_v46 }
 0x11f   :  { %v65_v48 = vpop.xlane.xlu1 %64  ;;  %v67_v49 = vpop.xlane.xlu0 %66 }
 0x120   :  { %2647 = vrsqrt.f32 %v74_v47  ;;  %v71_v50 = vmul.f32 0.0078125, %v65_v48  ;;  %v72_v51 = vmul.f32 0.0078125, %v67_v49 }
 0x122   :  { %v75_v52 = vadd.f32 1e-05, %v71_v50  ;;  %v76_v53 = vadd.f32 1e-05, %v72_v51 }
 0x123   :  { %v69_v54 = vpop.xlane.xlu1 %68 }
 0x124   :  { %2649 = vrsqrt.f32 %v75_v52  ;;  %v73_v55 = vmul.f32 0.0078125, %v69_v54 }
 0x125   :  { %2651 = vrsqrt.f32 %v76_v53 }
 0x126   :  { %v77_v56 = vadd.f32 1e-05, %v73_v55 }
 0x128   :  { %2653 = vrsqrt.f32 %v77_v56 }
 0x12d   :  { %v2648_v57 = vpop.eup %2647 }
 0x12e   :  { %v82_v58 = vmul.f32 %v2648_v57, %v2835_v10 }
 0x130   :  { %v93_v63 = vmul.f32 %v2203_v59, %v82_v58 }
 0x131   :  { %v2650_v60 = vpop.eup %2649 }
 0x132   :  { %v2652_v61 = vpop.eup %2651  ;;  %v83_v62 = vmul.f32 %v2650_v60, %v2841_v17  ;;  %v104_v4 = vadd.f32 %v2204_v0, %v93_v63 }
 0x133   :  { %v84_v1 = vmul.f32 %v2652_v61, %v2837_v11 }
 0x134   :  { %v94_v2 = vmul.f32 %v2203_v59, %v83_v62 }
 0x135   :  { %v2654_v3 = vpop.eup %2653  ;;  %v95_v7 = vmul.f32 %v2203_v59, %v84_v1 }
 0x136   :  { %v105_v5 = vadd.f32 %v2204_v0, %v94_v2  ;;  %v85_v6 = vmul.f32 %v2654_v3, %v2843_v18 }
 0x137   :  { %v106_v10 = vadd.f32 %v2204_v0, %v95_v7 }
 0x138   :  { %v108_v8 = vpack.c.bf16 %v105_v5, %v104_v4  ;;  %v96_v9 = vmul.f32 %v2203_v59, %v85_v6 }
 0x13a   :  { %303 = vmatmul.mubr.bf16.vlgmr.msra.gmra.mxu0 %v108_v8  ;;  %2426 = vmatprep.mubr.bf16.mxu1 %v108_v8  ;;  %v107_v12 = vadd.f32 %v2204_v0, %v96_v9 }
 0x13b   :  { %312 = vmatprep.mubr.bf16.mxu0 %v2753_v39 }
 0x13c   :  { %v109_v13 = vpack.c.bf16 %v107_v12, %v106_v10 }
 0x13e   :  { %2427 = vmatmul.mubr.bf16.vlgmr.msra.gmra.mxu1 %v109_v13 }
 0x13f   :  { %2432 = vmatprep.mubr.msk.bf16.mxu1 %vm2755_vm0, %v2754_v14 }
 0x142   :  { %313 = vmatmul.mubr.bf16.gmra.mxu0 %v109_v13 }
 0x143   :  { %2438 = vmatprep.mubr.msk.bf16.mxu0 %vm2755_vm0, %v2754_v14 }
 0x1fa   :  { %v304_v11 = vpop.f32.mrf.mxu0 }
 0x1fc   :  { %v306_v15 = vpop.f32.mrf.mxu0 }
 0x1fe   :  { %v308_v16 = vpop.f32.mrf.mxu0  ;;  %v2428_v17 = vpop.f32.mrf.mxu1 }
 0x1ff   :  { %v372_v18 = vpack.c.bf16 %v308_v16, %v304_v11 }
 0x200   :  { %v310_v19 = vpop.f32.mrf.mxu0  ;;  %v357_v20 = vpop.f32.mrf.mxu1 }
 0x201   :  { %v374_v21 = vpack.c.bf16 %v310_v19, %v306_v15  ;;  %495 = vrot.lane.b32.xlu1 %v372_v18, %s2756_s1 }
 0x202   :  { %v314_v22 = vpop.f32.mrf.mxu0  ;;  %v2429_v23 = vpop.f32.mrf.mxu1 }
 0x203   :  { %v2936_v24 = vpack.c.bf16 %v2429_v23, %v2428_v17  ;;  %498 = vrot.lane.b32.xlu0 %v374_v21, %s2756_s1  ;;  %v383_v25 = vsel %vm378_vm1, %v374_v21, 0 }
 0x204   :  { %v316_v26 = vpop.f32.mrf.mxu0  ;;  %v360_v27 = vpop.f32.mrf.mxu1  ;;  %2431 = vmatpush3.bf16.xpose.msra.mxu1 %v383_v25 }
 0x205   :  { %v2940_v28 = vpack.c.bf16 %v360_v27, %v357_v20  ;;  %620 = vrot.lane.b32.xlu1 %v374_v21, %s2757_s2  ;;  %2442 = vmatprep.subr.bf16.mxu1 %v2754_v14 }
 0x206   :  { %v318_v29 = vpop.f32.mrf.mxu0 }
 0x207   :  { %741 = vrot.lane.b32.xlu0 %v374_v21, %s2758_s12  ;;  %2437 = vmatpush3.bf16.msra.mxu0 %v2940_v28  ;;  %v373_v32 = vpack.c.bf16 %v318_v29, %v314_v22 }
 0x208   :  { %v320_v30 = vpop.f32.mrf.mxu0  ;;  %2448 = vmatprep.subr.bf16.mxu0 %v2754_v14 }
 0x209   :  { %v375_v31 = vpack.c.bf16 %v320_v30, %v316_v26  ;;  %618 = vrot.lane.b32.xlu1 %v372_v18, %s2757_s2 }
 0x20b   :  { %2433 = vmatmul.mubr.msk.bf16.vlgmr.msra.gmra.mxu1 %vm378_vm1, %v372_v18  ;;  %1010 = vrot.lane.b32.xlu0 %v375_v31, %s2756_s1  ;;  %v896_v43 = vsel %vm378_vm1, %v375_v31, 0 }
 0x20c   :  { %2444 = vmatprep.mubr.msk.bf16.mxu1 %vm2755_vm0, %v2754_v14 }
 0x20d   :  { %739 = vrot.lane.b32.xlu1 %v372_v18, %s2758_s12 }
 0x20f   :  { %1132 = vrot.lane.b32.xlu0 %v375_v31, %s2757_s2 }
 0x211   :  { %1007 = vrot.lane.b32.xlu1 %v373_v32, %s2756_s1 }
 0x213   :  { %1253 = vrot.lane.b32.xlu0 %v375_v31, %s2758_s12 }
 0x215   :  { %1130 = vrot.lane.b32.xlu1 %v373_v32, %s2757_s2 }
 0x219   :  { %1251 = vrot.lane.b32.xlu1 %v373_v32, %s2758_s12 }
 0x273   :  { %v496_v33 = vpop.permute.xlu1 %495 }
 0x275   :  { %v499_v34 = vpop.permute.xlu0 %498 }
 0x276   :  { %v504_v35 = vsel %vm378_vm1, %v499_v34, 0 }
 0x277   :  { %2443 = vmatpush3.bf16.xpose.msra.mxu1 %v504_v35  ;;  %v621_v36 = vpop.permute.xlu1 %620 }
 0x278   :  { %2454 = vmatprep.subr.bf16.mxu1 %v2754_v14  ;;  %v626_v37 = vsel %vm378_vm1, %v621_v36, 0 }
 0x279   :  { %v742_v38 = vpop.permute.xlu0 %741 }
 0x27a   :  { %v747_v41 = vsel %vm378_vm1, %v742_v38, 0 }
 0x27b   :  { %v619_v40 = vpop.permute.xlu1 %618 }
 0x27d   :  { %v1011_v44 = vpop.permute.xlu0 %1010 }
 0x27e   :  { %2445 = vmatmul.mubr.msk.bf16.vlgmr.msra.gmra.mxu1 %vm378_vm1, %v496_v33  ;;  %v1016_v45 = vsel %vm378_vm1, %v1011_v44, 0 }
 0x27f   :  { %2455 = vmatpush3.bf16.xpose.msra.mxu1 %v626_v37  ;;  %2456 = vmatprep.mubr.msk.bf16.mxu1 %vm2755_vm0, %v2754_v14  ;;  %v740_v42 = vpop.permute.xlu1 %739 }
 0x280   :  { %2466 = vmatprep.subr.bf16.mxu1 %v2754_v14 }
 0x281   :  { %v1133_v46 = vpop.permute.xlu0 %1132 }
 0x282   :  { %v1138_v48 = vsel %vm378_vm1, %v1133_v46, 0 }
 0x283   :  { %v1008_v47 = vpop.permute.xlu1 %1007 }
 0x285   :  { %v1254_v49 = vpop.permute.xlu0 %1253 }
 0x286   :  { %2457 = vmatmul.mubr.msk.bf16.vlgmr.msra.gmra.mxu1 %vm378_vm1, %v619_v40  ;;  %v1259_v51 = vsel %vm378_vm1, %v1254_v49, 0 }
 0x287   :  { %2467 = vmatpush3.bf16.xpose.msra.mxu1 %v747_v41  ;;  %2468 = vmatprep.mubr.msk.bf16.mxu1 %vm2755_vm0, %v2754_v14  ;;  %v1131_v50 = vpop.permute.xlu1 %1130 }
 0x288   :  { %2478 = vmatprep.subr.bf16.mxu1 %v2754_v14 }
 0x28b   :  { %v1252_v52 = vpop.permute.xlu1 %1251 }
 0x28e   :  { %2469 = vmatmul.mubr.msk.bf16.vlgmr.msra.gmra.mxu1 %vm378_vm1, %v740_v42 }
 0x28f   :  { %2479 = vmatpush3.bf16.xpose.msra.mxu1 %v896_v43  ;;  %2480 = vmatprep.mubr.msk.bf16.mxu1 %vm2755_vm0, %v2754_v14 }
 0x290   :  { %2490 = vmatprep.subr.bf16.mxu1 %v2754_v14 }
 0x296   :  { %2481 = vmatmul.mubr.msk.bf16.vlgmr.msra.gmra.mxu1 %vm378_vm1, %v373_v32 }
 0x297   :  { %2491 = vmatpush3.bf16.xpose.msra.mxu1 %v1016_v45  ;;  %2492 = vmatprep.mubr.msk.bf16.mxu1 %vm2755_vm0, %v2754_v14 }
 0x298   :  { %2502 = vmatprep.subr.bf16.mxu1 %v2754_v14 }
 0x29e   :  { %2493 = vmatmul.mubr.msk.bf16.vlgmr.msra.gmra.mxu1 %vm378_vm1, %v1008_v47 }
 0x29f   :  { %2503 = vmatpush3.bf16.xpose.msra.mxu1 %v1138_v48  ;;  %2504 = vmatprep.mubr.msk.bf16.mxu1 %vm2755_vm0, %v2754_v14 }
 0x2a0   :  { %2514 = vmatprep.subr.bf16.mxu1 %v2754_v14 }
 0x2a6   :  { %2505 = vmatmul.mubr.msk.bf16.vlgmr.msra.gmra.mxu1 %vm378_vm1, %v1131_v50 }
 0x2a7   :  { %2515 = vmatpush3.bf16.xpose.msra.mxu1 %v1259_v51  ;;  %2516 = vmatprep.mubr.msk.bf16.mxu1 %vm2755_vm0, %v2754_v14 }
 0x2ae   :  { %2517 = vmatmul.mubr.msk.bf16.vlgmr.msra.gmra.mxu1 %vm378_vm1, %v1252_v52 }
 0x2af   :  { %1720 = vmatprep.mubr.bf16.mxu1 %v2753_v39 }
 0x2cb   :  { %v419_v53 = vpop.f32.mrf.mxu1 }
 0x2cc   :  { %v427_v54 = vsel %vm426_vm2, %v419_v53, -inf }
 0x2cd   :  { %v2434_v55 = vpop.f32.mrf.mxu1  ;;  %428 = vmax.xlane.f32.xlu0 %v427_v54 }
 0x2cf   :  { %v422_v56 = vpop.f32.mrf.mxu1 }
 0x2d0   :  { %v430_v57 = vsel %vm426_vm2, %v422_v56, -inf }
 0x2d1   :  { %v2435_v58 = vpop.f32.mrf.mxu1  ;;  %431 = vmax.xlane.f32.xlu1 %v430_v57 }
 0x33e   :  { %v2993_v59 = vpop.f32.mrf.mxu1 }
 0x33f   :  { %v547_v60 = vsel %vm426_vm2, %v2993_v59, -inf }
 0x340   :  { %548 = vmax.xlane.f32.xlu0 %v547_v60  ;;  %v2446_v61 = vpop.f32.mrf.mxu1 }
 0x342   :  { %v2997_v62 = vpop.f32.mrf.mxu1 }
 0x343   :  { %v550_v63 = vsel %vm426_vm2, %v2997_v62, -inf }
 0x344   :  { %551 = vmax.xlane.f32.xlu0 %v550_v63  ;;  %v2447_v0 = vpop.f32.mrf.mxu1 }
 0x346   :  { %v3001_v1 = vpop.f32.mrf.mxu1 }
 0x347   :  { %v669_v2 = vsel %vm426_vm2, %v3001_v1, -inf }
 0x348   :  { %670 = vmax.xlane.f32.xlu0 %v669_v2  ;;  %v2458_v3 = vpop.f32.mrf.mxu1 }
 0x34a   :  { %v3005_v4 = vpop.f32.mrf.mxu1 }
 0x34b   :  { %v672_v5 = vsel %vm426_vm2, %v3005_v4, -inf }
 0x34c   :  { %673 = vmax.xlane.f32.xlu1 %v672_v5  ;;  %v2459_v6 = vpop.f32.mrf.mxu1 }
 0x34e   :  { %v3009_v7 = vpop.f32.mrf.mxu1 }
 0x34f   :  { %v790_v8 = vsel %vm426_vm2, %v3009_v7, -inf }
 0x350   :  { %791 = vmax.xlane.f32.xlu0 %v790_v8  ;;  %v2470_v9 = vpop.f32.mrf.mxu1 }
 0x352   :  { %v3013_v10 = vpop.f32.mrf.mxu1 }
 0x353   :  { %v793_v12 = vsel %vm426_vm2, %v3013_v10, -inf }
 0x354   :  { %794 = vmax.xlane.f32.xlu1 %v793_v12  ;;  %v2471_v13 = vpop.f32.mrf.mxu1 }
 0x356   :  { %v3017_v11 = vpop.f32.mrf.mxu1  ;;  %v429_v15 = vpop.xlane.xlu0 %428 }
 0x357   :  { %v433_v16 = vsub.f32 %v419_v53, %v429_v15  ;;  %v939_v17 = vsel %vm426_vm2, %v3017_v11, -inf }
 0x358   :  { %940 = vmax.xlane.f32.xlu0 %v939_v17  ;;  %v2482_v18 = vpop.f32.mrf.mxu1 }
 0x359   :  { %v435_v19 = vmul.f32 1.442695, %v433_v16 }
 0x35a   :  { %v432_v20 = vpop.xlane.xlu1 %431  ;;  %v3021_v21 = vpop.f32.mrf.mxu1 }
 0x35b   :  { %2655 = vpow2.f32 %v435_v19  ;;  %v434_v22 = vsub.f32 %v422_v56, %v432_v20  ;;  %v942_v23 = vsel %vm426_vm2, %v3021_v21, -inf }
 0x35c   :  { %943 = vmax.xlane.f32.xlu1 %v942_v23  ;;  %v2483_v25 = vpop.f32.mrf.mxu1 }
 0x35d   :  { %v437_v26 = vmul.f32 1.442695, %v434_v22 }
 0x35e   :  { %v3025_v27 = vpop.f32.mrf.mxu1 }
 0x35f   :  { %2657 = vpow2.f32 %v437_v26  ;;  %v1059_v29 = vsel %vm426_vm2, %v3025_v27, -inf }
 0x360   :  { %1060 = vmax.xlane.f32.xlu0 %v1059_v29  ;;  %v2494_v30 = vpop.f32.mrf.mxu1 }
 0x362   :  { %v3029_v31 = vpop.f32.mrf.mxu1 }
 0x363   :  { %v1062_v32 = vsel %vm426_vm2, %v3029_v31, -inf }
 0x364   :  { %1063 = vmax.xlane.f32.xlu1 %v1062_v32  ;;  %v2495_v33 = vpop.f32.mrf.mxu1 }
 0x366   :  { %v3033_v34 = vpop.f32.mrf.mxu1 }
 0x367   :  { %v1181_v35 = vsel %vm426_vm2, %v3033_v34, -inf }
 0x368   :  { %v3037_v36 = vpop.eup %2655  ;;  %1182 = vmax.xlane.f32.xlu0 %v1181_v35  ;;  %v2506_v37 = vpop.f32.mrf.mxu1 }
 0x369   :  { %v439_v41 = vsel %vm426_vm2, %v3037_v36, 0.0 }
 0x36a   :  { %v3039_v38 = vpop.f32.mrf.mxu1 }
 0x36b   :  { %v1184_v40 = vsel %vm426_vm2, %v3039_v38, -inf }
 0x36c   :  { %v3045_v42 = vpop.eup %2657  ;;  %1185 = vmax.xlane.f32.xlu1 %v1184_v40  ;;  %v2507_v43 = vpop.f32.mrf.mxu1  ;;  %440 = vadd.xlane.f32.xlu0 %v439_v41 }
 0x36d   :  { %v442_v45 = vsel %vm426_vm2, %v3045_v42, 0.0 }
 0x36e   :  { %v3047_v44 = vpop.f32.mrf.mxu1 }
 0x36f   :  { %v1302_v46 = vsel %vm426_vm2, %v3047_v44, -inf }
 0x370   :  { %443 = vadd.xlane.f32.xlu1 %v442_v45  ;;  %v2518_v47 = vpop.f32.mrf.mxu1  ;;  %1303 = vmax.xlane.f32.xlu0 %v1302_v46 }
 0x372   :  { %v3053_v48 = vpop.f32.mrf.mxu1 }
 0x373   :  { %v1305_v49 = vsel %vm426_vm2, %v3053_v48, -inf }
 0x374   :  { %1306 = vmax.xlane.f32.xlu1 %v1305_v49  ;;  %v2519_v50 = vpop.f32.mrf.mxu1 }
 0x385   :  { %692 = vrot.lane.b32.xlu1 %v2940_v28, %s2757_s2 }
 0x386   :  { %571 = vrot.lane.b32.xlu0 %v2940_v28, %s2756_s1 }
 0x3c9   :  { %v549_v51 = vpop.xlane.xlu0 %548 }
 0x3ca   :  { %v553_v52 = vsub.f32 %v2993_v59, %v549_v51 }
 0x3cc   :  { %v555_v53 = vmul.f32 1.442695, %v553_v52 }
 0x3cd   :  { %v552_v54 = vpop.xlane.xlu0 %551 }
 0x3ce   :  { %2659 = vpow2.f32 %v555_v53  ;;  %v554_v55 = vsub.f32 %v2997_v62, %v552_v54 }
 0x3d0   :  { %v557_v56 = vmul.f32 1.442695, %v554_v55 }
 0x3d1   :  { %v671_v57 = vpop.xlane.xlu0 %670 }
 0x3d2   :  { %2661 = vpow2.f32 %v557_v56  ;;  %v675_v58 = vsub.f32 %v3001_v1, %v671_v57 }
 0x3d4   :  { %v677_v60 = vmul.f32 1.442695, %v675_v58 }
 0x3d5   :  { %v674_v61 = vpop.xlane.xlu1 %673 }
 0x3d6   :  { %2663 = vpow2.f32 %v677_v60  ;;  %v676_v63 = vsub.f32 %v3005_v4, %v674_v61 }
 0x3d8   :  { %v679_v0 = vmul.f32 1.442695, %v676_v63 }
 0x3d9   :  { %v792_v2 = vpop.xlane.xlu0 %791 }
 0x3da   :  { %2665 = vpow2.f32 %v679_v0  ;;  %v796_v59 = vsub.f32 %v3009_v7, %v792_v2 }
 0x3db   :  { %v3066_v3 = vpop.eup %2659 }
 0x3dc   :  { %v798_v5 = vmul.f32 1.442695, %v796_v59  ;;  %v559_v62 = vsel %vm426_vm2, %v3066_v3, 0.0 }
 0x3dd   :  { %v795_v6 = vpop.xlane.xlu1 %794  ;;  %560 = vadd.xlane.f32.xlu0 %v559_v62 }
 0x3de   :  { %2667 = vpow2.f32 %v798_v5  ;;  %v797_v1 = vsub.f32 %v3013_v10, %v795_v6 }
 0x3df   :  { %v3071_v8 = vpop.eup %2661 }
 0x3e0   :  { %v800_v9 = vmul.f32 1.442695, %v797_v1  ;;  %v562_v4 = vsel %vm426_vm2, %v3071_v8, 0.0 }
 0x3e1   :  { %563 = vadd.xlane.f32.xlu1 %v562_v4  ;;  %v941_v12 = vpop.xlane.xlu0 %940 }
 0x3e2   :  { %2669 = vpow2.f32 %v800_v9  ;;  %v945_v7 = vsub.f32 %v3017_v11, %v941_v12 }
 0x3e3   :  { %v3076_v13 = vpop.eup %2663 }
 0x3e4   :  { %v947_v15 = vmul.f32 1.442695, %v945_v7  ;;  %v681_v16 = vsel %vm426_vm2, %v3076_v13, 0.0 }
 0x3e5   :  { %v944_v17 = vpop.xlane.xlu1 %943  ;;  %682 = vadd.xlane.f32.xlu0 %v681_v16 }
 0x3e6   :  { %2671 = vpow2.f32 %v947_v15  ;;  %v946_v10 = vsub.f32 %v3021_v21, %v944_v17 }
 0x3e7   :  { %v3081_v18 = vpop.eup %2665 }
 0x3e8   :  { %v949_v19 = vmul.f32 1.442695, %v946_v10  ;;  %v684_v20 = vsel %vm426_vm2, %v3081_v18, 0.0 }
 0x3e9   :  { %685 = vadd.xlane.f32.xlu1 %v684_v20  ;;  %v1061_v22 = vpop.xlane.xlu0 %1060 }
 0x3ea   :  { %2673 = vpow2.f32 %v949_v19  ;;  %v1065_v11 = vsub.f32 %v3025_v27, %v1061_v22 }
 0x3eb   :  { %v3086_v23 = vpop.eup %2667 }
 0x3ec   :  { %v1067_v25 = vmul.f32 1.442695, %v1065_v11  ;;  %v802_v26 = vsel %vm426_vm2, %v3086_v23, 0.0 }
 0x3ed   :  { %v1064_v29 = vpop.xlane.xlu1 %1063  ;;  %803 = vadd.xlane.f32.xlu0 %v802_v26 }
 0x3ee   :  { %2675 = vpow2.f32 %v1067_v25  ;;  %v1066_v21 = vsub.f32 %v3029_v31, %v1064_v29 }
 0x3ef   :  { %v3091_v30 = vpop.eup %2669 }
 0x3f0   :  { %v1069_v32 = vmul.f32 1.442695, %v1066_v21  ;;  %v805_v33 = vsel %vm426_vm2, %v3091_v30, 0.0 }
 0x3f1   :  { %806 = vadd.xlane.f32.xlu1 %v805_v33  ;;  %v1183_v35 = vpop.xlane.xlu0 %1182 }
 0x3f2   :  { %2677 = vpow2.f32 %v1069_v32 }
 0x3f3   :  { %v3095_v27 = vpop.eup %2671 }
 0x3f4   :  { %v951_v37 = vsel %vm426_vm2, %v3095_v27, 0.0 }
 0x3f5   :  { %v1186_v40 = vpop.xlane.xlu1 %1185  ;;  %952 = vadd.xlane.f32.xlu0 %v951_v37  ;;  %v441_v41 = vpop.xlane.xlu0 %440 }
 0x3f6   :  { %v1188_v43 = vsub.f32 %v3039_v38, %v1186_v40  ;;  %2679 = vrcp.f32 %v441_v41 }
 0x3f7   :  { %v3100_v31 = vpop.eup %2673 }
 0x3f8   :  { %v1191_v45 = vmul.f32 1.442695, %v1188_v43  ;;  %v954_v46 = vsel %vm426_vm2, %v3100_v31, 0.0 }
 0x3f9   :  { %v444_v47 = vpop.xlane.xlu1 %443  ;;  %955 = vadd.xlane.f32.xlu1 %v954_v46  ;;  %v1304_v49 = vpop.xlane.xlu0 %1303 }
 0x3fa   :  { %2681 = vpow2.f32 %v1191_v45  ;;  %v1308_v50 = vsub.f32 %v3047_v44, %v1304_v49 }
 0x3fb   :  { %v3105_v51 = vpop.eup %2675  ;;  %2683 = vrcp.f32 %v444_v47 }
 0x3fc   :  { %v1310_v52 = vmul.f32 1.442695, %v1308_v50  ;;  %v1071_v38 = vsel %vm426_vm2, %v3105_v51, 0.0 }
 0x3fd   :  { %v1307_v53 = vpop.xlane.xlu1 %1306  ;;  %1072 = vadd.xlane.f32.xlu1 %v1071_v38  ;;  %v572_v5 = vpop.permute.xlu0 %571 }
 0x3fe   :  { %2685 = vpow2.f32 %v1310_v52  ;;  %v1309_v54 = vsub.f32 %v3053_v48, %v1307_v53 }
 0x3ff   :  { %v3110_v55 = vpop.eup %2677 }
 0x400   :  { %v1312_v56 = vmul.f32 1.442695, %v1309_v54  ;;  %v1074_v57 = vsel %vm426_vm2, %v3110_v55, 0.0 }
 0x401   :  { %1075 = vadd.xlane.f32.xlu1 %v1074_v57  ;;  %v693_v9 = vpop.permute.xlu1 %692 }
 0x402   :  { %2687 = vpow2.f32 %v1312_v56 }
 0x403   :  { %v2680_v44 = vpop.eup %2679 }
 0x404   :  { %v447_v63 = vmul.f32 %v2680_v44, %v3037_v36 }
 0x407   :  { %v3114_v58 = vpop.eup %2681 }
 0x408   :  { %v2684_v60 = vpop.eup %2683  ;;  %v1196_v61 = vsel %vm426_vm2, %v3114_v58, 0.0 }
 0x409   :  { %v448_v0 = vmul.f32 %v2684_v60, %v3045_v42  ;;  %1197 = vadd.xlane.f32.xlu1 %v1196_v61 }
 0x40b   :  { %v3120_v48 = vpop.eup %2685  ;;  %v449_v2 = vpack.c.bf16 %v448_v0, %v447_v63  ;;  %813 = vrot.lane.b32.xlu0 %v2940_v28, %s2758_s12  ;;  %v1187_v28 = vsub.f32 %v3033_v34, %v1183_v35 }
 0x40c   :  { %v1314_v59 = vsel %vm426_vm2, %v3120_v48, 0.0 }
 0x40d   :  { %2439 = vmatmul.mubr.msk.bf16.vlgmr.msra.gmra.mxu0 %vm426_vm2, %v449_v2  ;;  %1315 = vadd.xlane.f32.xlu1 %v1314_v59  ;;  %v1189_v62 = vmul.f32 1.442695, %v1187_v28 }
 0x40e   :  { %2449 = vmatpush3.bf16.msra.mxu0 %v572_v5  ;;  %2450 = vmatprep.mubr.msk.bf16.mxu0 %vm2755_vm0, %v2754_v14 }
 0x40f   :  { %v3129_v36 = vpop.eup %2687  ;;  %2460 = vmatprep.subr.bf16.mxu0 %v2754_v14  ;;  %2689 = vpow2.f32 %v1189_v62 }
 0x410   :  { %v1317_v42 = vsel %vm426_vm2, %v3129_v36, 0.0 }
 0x411   :  { %1318 = vadd.xlane.f32.xlu1 %v1317_v42 }
 0x41c   :  { %v3137_v6 = vpop.eup %2689 }
 0x41d   :  { %v1193_v1 = vsel %vm426_vm2, %v3137_v6, 0.0 }
 0x422   :  { %1083 = vrot.lane.b32.xlu1 %v2936_v24, %s2756_s1 }
 0x42a   :  { %1194 = vadd.xlane.f32.xlu0 %v1193_v1 }
 0x440   :  { %1204 = vrot.lane.b32.xlu0 %v2936_v24, %s2757_s2 }
 0x444   :  { %1325 = vrot.lane.b32.xlu0 %v2936_v24, %s2758_s12 }
 0x466   :  { %v561_v34 = vpop.xlane.xlu0 %560 }
 0x467   :  { %2691 = vrcp.f32 %v561_v34 }
 0x46a   :  { %v564_v4 = vpop.xlane.xlu1 %563 }
 0x46b   :  { %2693 = vrcp.f32 %v564_v4 }
 0x46e   :  { %v683_v12 = vpop.xlane.xlu0 %682 }
 0x46f   :  { %2695 = vrcp.f32 %v683_v12 }
 0x472   :  { %v686_v7 = vpop.xlane.xlu1 %685 }
 0x473   :  { %2697 = vrcp.f32 %v686_v7 }
 0x474   :  { %v2692_v15 = vpop.eup %2691 }
 0x475   :  { %v567_v10 = vmul.f32 %v2692_v15, %v3066_v3 }
 0x476   :  { %v804_v16 = vpop.xlane.xlu0 %803 }
 0x477   :  { %2699 = vrcp.f32 %v804_v16 }
 0x478   :  { %v2694_v17 = vpop.eup %2693 }
 0x479   :  { %v568_v19 = vmul.f32 %v2694_v17, %v3071_v8 }
 0x47a   :  { %v807_v20 = vpop.xlane.xlu1 %806 }
 0x47b   :  { %2701 = vrcp.f32 %v807_v20  ;;  %v569_v22 = vpack.c.bf16 %v568_v19, %v567_v10 }
 0x47c   :  { %v2696_v11 = vpop.eup %2695 }
 0x47d   :  { %2451 = vmatmul.mubr.msk.bf16.vlgmr.msra.gmra.mxu0 %vm426_vm2, %v569_v22  ;;  %v689_v29 = vmul.f32 %v2696_v11, %v3076_v13 }
 0x47e   :  { %2461 = vmatpush3.bf16.msra.mxu0 %v693_v9  ;;  %v953_v25 = vpop.xlane.xlu0 %952  ;;  %2462 = vmatprep.mubr.msk.bf16.mxu0 %vm2755_vm0, %v2754_v14 }
 0x47f   :  { %2472 = vmatprep.subr.bf16.mxu0 %v2754_v14  ;;  %2703 = vrcp.f32 %v953_v25 }
 0x480   :  { %v2698_v26 = vpop.eup %2697 }
 0x481   :  { %v690_v3 = vmul.f32 %v2698_v26, %v3081_v18 }
 0x482   :  { %v956_v8 = vpop.xlane.xlu1 %955  ;;  %v814_v32 = vpop.permute.xlu0 %813 }
 0x483   :  { %2705 = vrcp.f32 %v956_v8  ;;  %v691_v21 = vpack.c.bf16 %v690_v3, %v689_v29 }
 0x484   :  { %v2700_v33 = vpop.eup %2699 }
 0x485   :  { %2463 = vmatmul.mubr.msk.bf16.vlgmr.msra.gmra.mxu0 %vm426_vm2, %v691_v21  ;;  %v810_v40 = vmul.f32 %v2700_v33, %v3086_v23 }
 0x486   :  { %2473 = vmatpush3.bf16.msra.mxu0 %v814_v32  ;;  %v1073_v35 = vpop.xlane.xlu1 %1072  ;;  %2474 = vmatprep.mubr.msk.bf16.mxu0 %vm2755_vm0, %v2754_v14 }
 0x487   :  { %2484 = vmatprep.subr.bf16.mxu0 %v2754_v14 }
 0x488   :  { %v2702_v37 = vpop.eup %2701 }
 0x489   :  { %v811_v13 = vmul.f32 %v2702_v37, %v3091_v30 }
 0x48a   :  { %v1076_v18 = vpop.xlane.xlu1 %1075 }
 0x48b   :  { %v812_v41 = vpack.c.bf16 %v811_v13, %v810_v40  ;;  %2707 = vrcp.f32 %v1076_v18 }
 0x48c   :  { %v2704_v43 = vpop.eup %2703  ;;  %2709 = vrcp.f32 %v1073_v35 }
 0x48d   :  { %2475 = vmatmul.mubr.msk.bf16.vlgmr.msra.gmra.mxu0 %vm426_vm2, %v812_v41  ;;  %v959_v46 = vmul.f32 %v2704_v43, %v3095_v27 }
 0x48e   :  { %2485 = vmatpush3.bf16.msra.mxu0 %v2936_v24  ;;  %2486 = vmatprep.mubr.msk.bf16.mxu0 %vm2755_vm0, %v2754_v14 }
 0x48f   :  { %2496 = vmatprep.subr.bf16.mxu0 %v2754_v14 }
 0x490   :  { %v2706_v45 = vpop.eup %2705 }
 0x491   :  { %v960_v23 = vmul.f32 %v2706_v45, %v3100_v31 }
 0x492   :  { %v1198_v30 = vpop.xlane.xlu1 %1197 }
 0x493   :  { %v961_v47 = vpack.c.bf16 %v960_v23, %v959_v46  ;;  %2711 = vrcp.f32 %v1198_v30  ;;  %v2727_v30 = vld [vmem:[%s3470_s0] sm:$0xff] }
 0x495   :  { %2487 = vmatmul.mubr.msk.bf16.vlgmr.msra.gmra.mxu0 %vm426_vm2, %v961_v47 }
 0x496   :  { %v1316_v49 = vpop.xlane.xlu1 %1315  ;;  %2498 = vmatprep.mubr.msk.bf16.mxu0 %vm2755_vm0, %v2754_v14 }
 0x498   :  { %v2708_v50 = vpop.eup %2707 }
 0x499   :  { %v2710_v52 = vpop.eup %2709  ;;  %v1080_v38 = vmul.f32 %v2708_v50, %v3110_v55 }
 0x49a   :  { %v1319_v24 = vpop.xlane.xlu1 %1318  ;;  %v1079_v54 = vmul.f32 %v2710_v52, %v3105_v51 }
 0x49c   :  { %v1081_v27 = vpack.c.bf16 %v1080_v38, %v1079_v54  ;;  %v2728_v38 = vld [vmem:[%s3470_s0 + $0x8] sm:$0xff] }
 0x49e   :  { %v1084_v53 = vpop.permute.xlu1 %1083 }
 0x49f   :  { %2497 = vmatpush3.bf16.msra.mxu0 %v1084_v53 }
 0x4a0   :  { %2508 = vmatprep.subr.bf16.mxu0 %v2754_v14  ;;  %v2712_v55 = vpop.eup %2711 }
 0x4a1   :  { %v1202_v44 = vmul.f32 %v2712_v55, %v3114_v58 }
 0x4a2   :  { %2499 = vmatmul.mubr.msk.bf16.vlgmr.msra.gmra.mxu0 %vm426_vm2, %v1081_v27 }
 0x4a3   :  { %2510 = vmatprep.mubr.msk.bf16.mxu0 %vm2755_vm0, %v2754_v14 }
 0x4b3   :  { %v1195_v31 = vpop.xlane.xlu0 %1194 }
 0x4b4   :  { %2713 = vrcp.f32 %v1195_v31 }
 0x4b5   :  { %2715 = vrcp.f32 %v1319_v24 }
 0x4b6   :  { %2717 = vrcp.f32 %v1316_v49 }
 0x4b7   :  { %v1205_v56 = vpop.permute.xlu0 %1204 }
 0x4b8   :  { %2509 = vmatpush3.bf16.msra.mxu0 %v1205_v56 }
 0x4b9   :  { %2520 = vmatprep.subr.bf16.mxu0 %v2754_v14 }
 0x4bb   :  { %v1326_v63 = vpop.permute.xlu0 %1325 }
 0x4c1   :  { %v2714_v51 = vpop.eup %2713 }
 0x4c2   :  { %v1201_v57 = vmul.f32 %v2714_v51, %v3137_v6  ;;  %v2716_v61 = vpop.eup %2715 }
 0x4c3   :  { %v2718_v0 = vpop.eup %2717  ;;  %v1323_v2 = vmul.f32 %v2716_v61, %v3129_v36 }
 0x4c4   :  { %v1203_v60 = vpack.c.bf16 %v1202_v44, %v1201_v57  ;;  %v1322_v59 = vmul.f32 %v2718_v0, %v3120_v48 }
 0x4c6   :  { %2511 = vmatmul.mubr.msk.bf16.vlgmr.msra.gmra.mxu0 %vm426_vm2, %v1203_v60  ;;  %v1324_v5 = vpack.c.bf16 %v1323_v2, %v1322_v59  ;;  %v2729_v60 = vld [vmem:[%s3470_s0 + $0x10] sm:$0xff] }
 0x4c7   :  { %2521 = vmatpush3.bf16.msra.mxu0 %v1326_v63  ;;  %2522 = vmatprep.mubr.msk.bf16.mxu0 %vm2755_vm0, %v2754_v14 }
 0x4cd   :  { %v487_v42 = vpop.f32.mrf.mxu0 }
 0x4ce   :  { %2523 = vmatmul.mubr.msk.bf16.vlgmr.msra.gmra.mxu0 %vm426_vm2, %v1324_v5  ;;  %v2730_v5 = vld [vmem:[%s3470_s0 + $0x18] sm:$0xff] }
 0x4cf   :  { %v2440_v28 = vpop.f32.mrf.mxu0  ;;  %1773 = vmatprep.mubr.bf16.mxu0 %v2753_v39 }
 0x4d0   :  { %v2567_v28 = vld [vmem:[%s3476_s6 + $0xe0] ss:$16 sps:$4 sm:$0xff]  }
 0x4d1   :  { %v490_v58 = vpop.f32.mrf.mxu0 }
 0x4d3   :  { %v2441_v62 = vpop.f32.mrf.mxu0 }
 0x4d4   :  { %v2570_v62 = vld [vmem:[%s3476_s6 + $0xe8] ss:$16 sps:$4 sm:$0xff]  }
 0x53d   :  { %v611_v6 = vpop.f32.mrf.mxu0 }
 0x53e   :  { %862 = vrot.lane.b32.xlu0 %v611_v6, %s2758_s12  ;;  %v2572_v6 = vld [vmem:[%s3476_s6 + $0xec] ss:$16 sps:$4 sm:$0xff]  }
 0x53f   :  { %v2452_v1 = vpop.f32.mrf.mxu0  ;;  %1741 = vmatprep.subr.bf16.mxu0 %v2572_v6  ;;  %v2246_v6 = vld [vmem:[%s3475_s5] ss:$0 sm:$0xff] }
 0x540   :  { %1742 = vmatpush1.bf16.msra.mxu0 %v2570_v62 }
 0x541   :  { %v614_v9 = vpop.f32.mrf.mxu0 }
 0x542   :  { %864 = vrot.lane.b32.xlu1 %v614_v9, %s2758_s12 }
 0x543   :  { %v2453_v14 = vpop.f32.mrf.mxu0 }
 0x545   :  { %v732_v36 = vpop.f32.mrf.mxu0 }
 0x546   :  { %870 = vrot.lane.b32.xlu0 %v732_v36, %s2757_s2 }
 0x547   :  { %v2464_v48 = vpop.f32.mrf.mxu0 }
 0x549   :  { %v735_v34 = vpop.f32.mrf.mxu0 }
 0x54a   :  { %872 = vrot.lane.b32.xlu1 %v735_v34, %s2757_s2 }
 0x54b   :  { %v2465_v4 = vpop.f32.mrf.mxu0 }
 0x54d   :  { %v853_v12 = vpop.f32.mrf.mxu0 }
 0x54e   :  { %878 = vrot.lane.b32.xlu0 %v853_v12, %s2756_s1 }
 0x54f   :  { %v2476_v7 = vpop.f32.mrf.mxu0 }
 0x550   :  { %v2575_v7 = vld [vmem:[%s3476_s6 + $0xc4] ss:$16 sps:$4 sm:$0xff]  }
 0x551   :  { %v856_v15 = vpop.f32.mrf.mxu0 }
 0x552   :  { %880 = vrot.lane.b32.xlu1 %v856_v15, %s2756_s1  ;;  %v2578_v15 = vld [vmem:[%s3476_s6 + $0xcc] ss:$16 sps:$4 sm:$0xff]  }
 0x553   :  { %v2477_v16 = vpop.f32.mrf.mxu0  ;;  %1743 = vmatprep.subr.bf16.mxu0 %v2578_v15  ;;  %v2622_v15 = vld [vmem:[%s3478_s8 + $0xb0] sm:$0xff]  }
 0x554   :  { %v2573_v16 = vld [vmem:[%s3476_s6 + $0xc0] ss:$16 sps:$4 sm:$0xff]  }
 0x555   :  { %v999_v17 = vpop.f32.mrf.mxu0 }
 0x557   :  { %v2488_v10 = vpop.f32.mrf.mxu0 }
 0x558   :  { %v2581_v10 = vld [vmem:[%s3476_s6 + $0xa4] ss:$16 sps:$4 sm:$0xff]  }
 0x559   :  { %v1002_v19 = vpop.f32.mrf.mxu0 }
 0x55b   :  { %v2489_v20 = vpop.f32.mrf.mxu0 }
 0x55c   :  { %v2579_v20 = vld [vmem:[%s3476_s6 + $0xa0] ss:$16 sps:$4 sm:$0xff]  }
 0x562   :  { %v1123_v22 = vpop.f32.mrf.mxu0 }
 0x563   :  { %1374 = vrot.lane.b32.xlu0 %v1123_v22, %s2758_s12  ;;  %v2582_v22 = vld [vmem:[%s3476_s6 + $0xa8] ss:$16 sps:$4 sm:$0xff]  }
 0x564   :  { %v2500_v11 = vpop.f32.mrf.mxu0 }
 0x565   :  { %v2587_v11 = vld [vmem:[%s3476_s6 + $0x84] ss:$16 sps:$4 sm:$0xff]  }
 0x566   :  { %v1126_v25 = vpop.f32.mrf.mxu0 }
 0x567   :  { %1376 = vrot.lane.b32.xlu1 %v1126_v25, %s2758_s12  ;;  %v2585_v25 = vld [vmem:[%s3476_s6 + $0x80] ss:$16 sps:$4 sm:$0xff]  }
 0x568   :  { %v2501_v26 = vpop.f32.mrf.mxu0 }
 0x569   :  { %v2588_v26 = vld [vmem:[%s3476_s6 + $0x88] ss:$16 sps:$4 sm:$0xff]  }
 0x586   :  { %v1244_v29 = vpop.f32.mrf.mxu0 }
 0x587   :  { %1382 = vrot.lane.b32.xlu0 %v1244_v29, %s2757_s2  ;;  %v2590_v29 = vld [vmem:[%s3476_s6 + $0x8c] ss:$16 sps:$4 sm:$0xff]  }
 0x588   :  { %v2512_v3 = vpop.f32.mrf.mxu0 }
 0x589   :  { %v2593_v3 = vld [vmem:[%s3476_s6 + $0x64] ss:$16 sps:$4 sm:$0xff]  }
 0x58a   :  { %v1247_v8 = vpop.f32.mrf.mxu0 }
 0x58b   :  { %1384 = vrot.lane.b32.xlu1 %v1247_v8, %s2757_s2  ;;  %v2596_v8 = vld [vmem:[%s3476_s6 + $0x6c] ss:$16 sps:$4 sm:$0xff]  }
 0x58c   :  { %v2513_v21 = vpop.f32.mrf.mxu0 }
 0x58d   :  { %v2591_v21 = vld [vmem:[%s3476_s6 + $0x60] ss:$16 sps:$4 sm:$0xff]  }
 0x58e   :  { %v1365_v32 = vpop.f32.mrf.mxu0 }
 0x58f   :  { %1390 = vrot.lane.b32.xlu0 %v1365_v32, %s2756_s1  ;;  %v2594_v32 = vld [vmem:[%s3476_s6 + $0x68] ss:$16 sps:$4 sm:$0xff]  }
 0x590   :  { %v2524_v33 = vpop.f32.mrf.mxu0 }
 0x591   :  { %v2599_v33 = vld [vmem:[%s3476_s6 + $0x44] ss:$16 sps:$4 sm:$0xff]  }
 0x592   :  { %v1368_v35 = vpop.f32.mrf.mxu0 }
 0x593   :  { %1392 = vrot.lane.b32.xlu1 %v1368_v35, %s2756_s1  ;;  %v2602_v35 = vld [vmem:[%s3476_s6 + $0x4c] ss:$16 sps:$4 sm:$0xff]  }
 0x594   :  { %v2525_v37 = vpop.f32.mrf.mxu0 }
 0x595   :  { %v2597_v37 = vld [vmem:[%s3476_s6 + $0x40] ss:$16 sps:$4 sm:$0xff]  }
 0x5b0   :  { %v863_v40 = vpop.permute.xlu0 %862 }
 0x5b1   :  { %v884_v41 = vsel %vm378_vm1, %v487_v42, %v863_v40  ;;  %v2600_v40 = vld [vmem:[%s3476_s6 + $0x48] ss:$16 sps:$4 sm:$0xff]  }
 0x5b4   :  { %v865_v13 = vpop.permute.xlu1 %864 }
 0x5b5   :  { %v885_v49 = vsel %vm378_vm1, %v490_v58, %v865_v13  ;;  %v2569_v58 = vld [vmem:[%s3476_s6 + $0xe4] ss:$16 sps:$4 sm:$0xff]  }
 0x5b6   :  { %1688 = vmatprep.subr.bf16.mxu1 %v2569_v58  ;;  %v2605_v13 = vld [vmem:[%s3476_s6 + $0x24] ss:$16 sps:$4 sm:$0xff]  }
 0x5b7   :  { %1689 = vmatpush1.bf16.msra.mxu1 %v2567_v28 }
 0x5b8   :  { %v871_v18 = vpop.permute.xlu0 %870  ;;  %1690 = vmatprep.subr.bf16.mxu1 %v2575_v7  ;;  %v2621_v7 = vld [vmem:[%s3478_s8 + $0x30] sm:$0xff]  }
 0x5b9   :  { %v887_v43 = vsel %vm886_vm3, %v884_v41, %v871_v18  ;;  %v2608_v18 = vld [vmem:[%s3476_s6 + $0x2c] ss:$16 sps:$4 sm:$0xff]   ;;  %v2603_v41 = vld [vmem:[%s3476_s6 + $0x20] ss:$16 sps:$4 sm:$0xff]  }
 0x5bb   :  { %1691 = vmatpush1.bf16.msra.mxu1 %v2573_v16  ;;  %v2623_v16 = vld [vmem:[%s3478_s8 + $0x68] sm:$0xff]  }
 0x5bc   :  { %v873_v45 = vpop.permute.xlu1 %872  ;;  %1692 = vmatprep.subr.bf16.mxu1 %v2581_v10  ;;  %v2626_v10 = vld [vmem:[%s3478_s8 + $0xa8] sm:$0xff]  }
 0x5bd   :  { %v888_v50 = vsel %vm886_vm3, %v885_v49, %v873_v45  ;;  %v2611_v45 = vld [vmem:[%s3476_s6 + $0x4] ss:$16 sps:$4 sm:$0xff]  }
 0x5bf   :  { %1693 = vmatpush1.bf16.msra.mxu1 %v2579_v20  ;;  %v2628_v20 = vld [vmem:[%s3478_s8 + $0xe0] sm:$0xff]  }
 0x5c0   :  { %v879_v46 = vpop.permute.xlu0 %878  ;;  %1694 = vmatprep.subr.bf16.mxu1 %v2587_v11  ;;  %v2630_v11 = vld [vmem:[%s3478_s8 + $0xa0] sm:$0xff]  }
 0x5c1   :  { %v890_v23 = vsel %vm889_vm4, %v887_v43, %v879_v46  ;;  %v2606_v43 = vld [vmem:[%s3476_s6 + $0x28] ss:$16 sps:$4 sm:$0xff]   ;;  %v2614_v46 = vld [vmem:[%s3476_s6 + $0xc] ss:$16 sps:$4 sm:$0xff]  }
 0x5c2   :  { %v3203_v47 = vadd.f32 %v2727_v30, %v890_v23  ;;  %v2609_v23 = vld [vmem:[%s3476_s6] ss:$16 sps:$4 sm:$0xff]   ;;  %v2612_v30 = vld [vmem:[%s3476_s6 + $0x8] ss:$16 sps:$4 sm:$0xff]  }
 0x5c3   :  { %1695 = vmatpush1.bf16.msra.mxu1 %v2585_v25  ;;  %v2631_v25 = vld [vmem:[%s3478_s8 + $0x58] sm:$0xff]  }
 0x5c4   :  { %v881_v24 = vpop.permute.xlu1 %880  ;;  %1406 = vadd.xlane.f32.xlu0 %v3203_v47  ;;  %1696 = vmatprep.subr.bf16.mxu1 %v2593_v3  ;;  %v2634_v3 = vld [vmem:[%s3478_s8 + $0x98] sm:$0xff]  }
 0x5c5   :  { %v891_v52 = vsel %vm889_vm4, %v888_v50, %v881_v24 }
 0x5c6   :  { %v3212_v53 = vadd.f32 %v2728_v38, %v891_v52 }
 0x5c7   :  { %1697 = vmatpush1.bf16.msra.mxu1 %v2591_v21 }
 0x5c8   :  { %1408 = vadd.xlane.f32.xlu1 %v3212_v53  ;;  %1698 = vmatprep.subr.bf16.mxu1 %v2599_v33 }
 0x5cb   :  { %1699 = vmatpush1.bf16.msra.mxu1 %v2597_v37 }
 0x5cc   :  { %1700 = vmatprep.subr.bf16.mxu1 %v2605_v13 }
 0x5cf   :  { %1701 = vmatpush1.bf16.msra.mxu1 %v2603_v41 }
 0x5d0   :  { %1702 = vmatprep.subr.bf16.mxu1 %v2611_v45 }
 0x5d3   :  { %1703 = vmatpush1.bf16.msra.mxu1 %v2609_v23 }
 0x5d5   :  { %v1375_v54 = vpop.permute.xlu0 %1374 }
 0x5d6   :  { %v1396_v56 = vsel %vm378_vm1, %v999_v17, %v1375_v54  ;;  %v2576_v17 = vld [vmem:[%s3476_s6 + $0xc8] ss:$16 sps:$4 sm:$0xff]  }
 0x5d7   :  { %1744 = vmatpush1.bf16.msra.mxu0 %v2576_v17  ;;  %v2625_v17 = vld [vmem:[%s3478_s8 + $0x28] sm:$0xff]  }
 0x5d9   :  { %v1377_v27 = vpop.permute.xlu1 %1376 }
 0x5da   :  { %v1397_v63 = vsel %vm378_vm1, %v1002_v19, %v1377_v27  ;;  %v2584_v19 = vld [vmem:[%s3476_s6 + $0xac] ss:$16 sps:$4 sm:$0xff]  }
 0x5db   :  { %1745 = vmatprep.subr.bf16.mxu0 %v2584_v19  ;;  %v2627_v19 = vld [vmem:[%s3478_s8 + $0x60] sm:$0xff]  }
 0x5dc   :  { %1746 = vmatpush1.bf16.msra.mxu0 %v2582_v22  ;;  %v2629_v22 = vld [vmem:[%s3478_s8 + $0x20] sm:$0xff]  }
 0x5dd   :  { %1747 = vmatprep.subr.bf16.mxu0 %v2590_v29  ;;  %v2633_v29 = vld [vmem:[%s3478_s8 + $0x18] sm:$0xff]  }
 0x5e0   :  { %1748 = vmatpush1.bf16.msra.mxu0 %v2588_v26  ;;  %v2632_v26 = vld [vmem:[%s3478_s8 + $0xd8] sm:$0xff]  }
 0x5e1   :  { %1749 = vmatprep.subr.bf16.mxu0 %v2596_v8 }
 0x5e4   :  { %1750 = vmatpush1.bf16.msra.mxu0 %v2594_v32 }
 0x5e5   :  { %1751 = vmatprep.subr.bf16.mxu0 %v2602_v35 }
 0x5e8   :  { %1752 = vmatpush1.bf16.msra.mxu0 %v2600_v40 }
 0x5e9   :  { %1753 = vmatprep.subr.bf16.mxu0 %v2608_v18 }
 0x5ec   :  { %1754 = vmatpush1.bf16.msra.mxu0 %v2606_v43 }
 0x5ed   :  { %1755 = vmatprep.subr.bf16.mxu0 %v2614_v46 }
 0x5f0   :  { %1756 = vmatpush1.bf16.msra.mxu0 %v2612_v30 }
 0x5f9   :  { %v1383_v31 = vpop.permute.xlu0 %1382 }
 0x5fa   :  { %v1398_v55 = vsel %vm886_vm3, %v1396_v56, %v1383_v31  ;;  %v2615_v56 = vld [vmem:[%s3478_s8 + $0x78] sm:$0xff]  }
 0x5fb   :  { %2354 = vmatprep.subr.bf16.mxu1 %v2615_v56  ;;  %v2643_v56 = vld [vmem:[%s3478_s8 + $0x40] sm:$0xff]  }
 0x5fd   :  { %v1385_v51 = vpop.permute.xlu1 %1384 }
 0x5fe   :  { %v1399_v0 = vsel %vm886_vm3, %v1397_v63, %v1385_v51 }
 0x601   :  { %v1391_v57 = vpop.permute.xlu0 %1390 }
 0x602   :  { %v1400_v44 = vsel %vm889_vm4, %v1398_v55, %v1391_v57  ;;  %v2616_v55 = vld [vmem:[%s3478_s8 + $0xf8] sm:$0xff]  }
 0x603   :  { %v3221_v61 = vadd.f32 %v2729_v60, %v1400_v44  ;;  %2382 = vmatprep.subr.bf16.mxu0 %v2616_v55  ;;  %v2644_v55 = vld [vmem:[%s3478_s8 + $0xc0] sm:$0xff]  }
 0x605   :  { %v1393_v2 = vpop.permute.xlu1 %1392  ;;  %1410 = vadd.xlane.f32.xlu0 %v3221_v61 }
 0x606   :  { %v1401_v59 = vsel %vm889_vm4, %v1399_v0, %v1393_v2 }
 0x607   :  { %v3230_v42 = vadd.f32 %v2730_v5, %v1401_v59  ;;  %v2245_v5 = vld [vmem:[%s3474_s4] ss:$0 sm:$0xff] }
 0x609   :  { %1412 = vadd.xlane.f32.xlu0 %v3230_v42 }
 0x64d   :  { %v1407_v1 = vpop.xlane.xlu0 %1406 }
 0x64e   :  { %v1414_v9 = vmul.f32 0.0078125, %v1407_v1 }
 0x650   :  { %v3246_v14 = vsub.f32 %v3203_v47, %v1414_v9 }
 0x651   :  { %v1409_v36 = vpop.xlane.xlu1 %1408 }
 0x652   :  { %v1415_v48 = vmul.f32 0.0078125, %v1409_v36  ;;  %v1422_v34 = vmul.f32 %v3246_v14, %v3246_v14 }
 0x654   :  { %v3251_v4 = vsub.f32 %v3212_v53, %v1415_v48  ;;  %1426 = vadd.xlane.f32.xlu0 %v1422_v34  ;;  %v2618_v34 = vld [vmem:[%s3478_s8 + $0xb8] sm:$0xff]  }
 0x656   :  { %v1423_v12 = vmul.f32 %v3251_v4, %v3251_v4 }
 0x658   :  { %1428 = vadd.xlane.f32.xlu1 %v1423_v12  ;;  %v2620_v12 = vld [vmem:[%s3478_s8 + $0xf0] sm:$0xff]  }
 0x68e   :  { %v1411_v49 = vpop.xlane.xlu0 %1410 }
 0x68f   :  { %v1416_v50 = vmul.f32 0.0078125, %v1411_v49  ;;  %v2635_v49 = vld [vmem:[%s3478_s8 + $0x50] sm:$0xff]  }
 0x691   :  { %v3340_v24 = vsub.f32 %v3221_v61, %v1416_v50  ;;  %v2636_v50 = vld [vmem:[%s3478_s8 + $0xd0] sm:$0xff]  }
 0x692   :  { %v1413_v52 = vpop.xlane.xlu0 %1412 }
 0x693   :  { %v1417_v38 = vmul.f32 0.0078125, %v1413_v52  ;;  %v1424_v54 = vmul.f32 %v3340_v24, %v3340_v24  ;;  %v2638_v52 = vld [vmem:[%s3478_s8 + $0x90] sm:$0xff]  }
 0x695   :  { %v3345_v27 = vsub.f32 %v3230_v42, %v1417_v38  ;;  %1430 = vadd.xlane.f32.xlu0 %v1424_v54  ;;  %v2639_v38 = vld [vmem:[%s3478_s8 + $0x48] sm:$0xff]  }
 0x696   :  { %v2640_v54 = vld [vmem:[%s3478_s8 + $0xc8] sm:$0xff]  }
 0x697   :  { %v1425_v31 = vmul.f32 %v3345_v27, %v3345_v27 }
 0x699   :  { %1432 = vadd.xlane.f32.xlu1 %v1425_v31  ;;  %v2642_v31 = vld [vmem:[%s3478_s8 + $0x88] sm:$0xff]  }
 0x6dd   :  { %v1427_v51 = vpop.xlane.xlu0 %1426 }
 0x6de   :  { %v1434_v57 = vmul.f32 0.0078125, %v1427_v51  ;;  %v2645_v51 = vld [vmem:[%s3478_s8] sm:$0xff]  }
 0x6e0   :  { %v1438_v44 = vadd.f32 1e-05, %v1434_v57  ;;  %v2646_v57 = vld [vmem:[%s3478_s8 + $0x80] sm:$0xff]  }
 0x6e1   :  { %v1429_v60 = vpop.xlane.xlu1 %1428 }
 0x6e2   :  { %2719 = vrsqrt.f32 %v1438_v44  ;;  %v1435_v63 = vmul.f32 0.0078125, %v1429_v60  ;;  %v1508_v44 = vlaneseq }
 0x6e4   :  { %v1439_v0 = vadd.f32 1e-05, %v1435_v63  ;;  %v1509_v60 = vshrl.u32 %v1508_v44, 7 }
 0x6e6   :  { %2721 = vrsqrt.f32 %v1439_v0  ;;  %v1514_v63 = vsub.s32 1, %v1509_v60  ;;  %v1522_v0 = vsub.s32 3, %v1509_v60 }
 0x6ef   :  { %v2720_v2 = vpop.eup %2719 }
 0x6f0   :  { %v1446_v59 = vmul.f32 %v2720_v2, %v3246_v14  ;;  %v2617_v14 = vld [vmem:[%s3478_s8 + $0x38] sm:$0xff]   ;;  %v1510_v2 = vsub.s32 0, %v1509_v60 }
 0x6f2   :  { %v1457_v62 = vmul.f32 %v2245_v5, %v1446_v59  ;;  %v1518_v59 = vsub.s32 2, %v1509_v60 }
 0x6f3   :  { %v2722_v28 = vpop.eup %2721 }
 0x6f4   :  { %v1447_v58 = vmul.f32 %v2722_v28, %v3251_v4  ;;  %v1468_v9 = vadd.f32 %v2246_v6, %v1457_v62  ;;  %v2619_v4 = vld [vmem:[%s3478_s8 + $0x70] sm:$0xff]  }
 0x6f6   :  { %v1458_v1 = vmul.f32 %v2245_v5, %v1447_v58 }
 0x6f8   :  { %v1469_v36 = vadd.f32 %v2246_v6, %v1458_v1 }
 0x6fa   :  { %v1472_v48 = vpack.c.bf16 %v1469_v36, %v1468_v9 }
 0x6fc   :  { %1721 = vmatmul.mubr.bf16.vlgmr.msra.gmra.mxu1 %v1472_v48  ;;  %1774 = vmatmul.mubr.bf16.vlgmr.msra.gmra.mxu0 %v1472_v48 }
 0x6fd   :  { %1730 = vmatprep.mubr.bf16.mxu1 %v2753_v39  ;;  %1783 = vmatprep.mubr.bf16.mxu0 %v2753_v39  ;;  %v2624_v39 = vld [vmem:[%s3478_s8 + $0xe8] sm:$0xff]  }
 0x6fe   :  { %2355 = vmatpush3.bf16.msra.mxu1 %v2617_v14  ;;  %2383 = vmatpush3.bf16.msra.mxu0 %v2618_v34 }
 0x6ff   :  { %2356 = vmatprep.subr.bf16.mxu1 %v2619_v4  ;;  %2384 = vmatprep.subr.bf16.mxu0 %v2620_v12 }
 0x702   :  { %2357 = vmatpush3.bf16.msra.mxu1 %v2621_v7  ;;  %2385 = vmatpush3.bf16.msra.mxu0 %v2622_v15 }
 0x703   :  { %2358 = vmatprep.subr.bf16.mxu1 %v2623_v16  ;;  %2386 = vmatprep.subr.bf16.mxu0 %v2624_v39 }
 0x706   :  { %2359 = vmatpush3.bf16.msra.mxu1 %v2625_v17  ;;  %2387 = vmatpush3.bf16.msra.mxu0 %v2626_v10 }
 0x707   :  { %2360 = vmatprep.subr.bf16.mxu1 %v2627_v19  ;;  %2388 = vmatprep.subr.bf16.mxu0 %v2628_v20 }
 0x70a   :  { %2361 = vmatpush3.bf16.msra.mxu1 %v2629_v22  ;;  %2389 = vmatpush3.bf16.msra.mxu0 %v2630_v11 }
 0x70b   :  { %2362 = vmatprep.subr.bf16.mxu1 %v2631_v25  ;;  %2390 = vmatprep.subr.bf16.mxu0 %v2632_v26 }
 0x70e   :  { %2363 = vmatpush3.bf16.msra.mxu1 %v2633_v29  ;;  %2391 = vmatpush3.bf16.msra.mxu0 %v2634_v3 }
 0x70f   :  { %2364 = vmatprep.subr.bf16.mxu1 %v2635_v49  ;;  %2392 = vmatprep.subr.bf16.mxu0 %v2636_v50 }
 0x712   :  { %2393 = vmatpush3.bf16.msra.mxu0 %v2638_v52 }
 0x713   :  { %2394 = vmatprep.subr.bf16.mxu0 %v2640_v54 }
 0x716   :  { %2395 = vmatpush3.bf16.msra.mxu0 %v2642_v31 }
 0x717   :  { %2396 = vmatprep.subr.bf16.mxu0 %v2644_v55 }
 0x71a   :  { %2397 = vmatpush3.bf16.msra.mxu0 %v2646_v57 }
 0x71e   :  { %v1431_v8 = vpop.xlane.xlu0 %1430 }
 0x71f   :  { %v1436_v21 = vmul.f32 0.0078125, %v1431_v8 }
 0x721   :  { %v1440_v32 = vadd.f32 1e-05, %v1436_v21 }
 0x722   :  { %v1433_v33 = vpop.xlane.xlu1 %1432 }
 0x723   :  { %2723 = vrsqrt.f32 %v1440_v32  ;;  %v1437_v35 = vmul.f32 0.0078125, %v1433_v33 }
 0x725   :  { %v1441_v37 = vadd.f32 1e-05, %v1437_v35 }
 0x727   :  { %2725 = vrsqrt.f32 %v1441_v37 }
 0x730   :  { %v2724_v40 = vpop.eup %2723 }
 0x731   :  { %v1448_v13 = vmul.f32 %v2724_v40, %v3340_v24  ;;  %v2637_v24 = vld [vmem:[%s3478_s8 + $0x10] sm:$0xff]  }
 0x732   :  { %2365 = vmatpush3.bf16.msra.mxu1 %v2637_v24 }
 0x733   :  { %v1459_v43 = vmul.f32 %v2245_v5, %v1448_v13  ;;  %2366 = vmatprep.subr.bf16.mxu1 %v2639_v38 }
 0x734   :  { %v2726_v18 = vpop.eup %2725 }
 0x735   :  { %v1449_v41 = vmul.f32 %v2726_v18, %v3345_v27  ;;  %v1470_v46 = vadd.f32 %v2246_v6, %v1459_v43  ;;  %v2641_v27 = vld [vmem:[%s3478_s8 + $0x8] sm:$0xff]  }
 0x736   :  { %2367 = vmatpush3.bf16.msra.mxu1 %v2641_v27 }
 0x737   :  { %v1460_v45 = vmul.f32 %v2245_v5, %v1449_v41  ;;  %2368 = vmatprep.subr.bf16.mxu1 %v2643_v56  ;;  %v1506_v5 = vld [vmem:[%s3477_s7] sm:$0xf] }
 0x738   :  { %v1515_v62 = vrot.slane %v1506_v5, %v1514_v63  ;;  %v1511_v1 = vrot.slane %v1506_v5, %v1510_v2  ;;  %v1519_v9 = vrot.slane %v1506_v5, %v1518_v59 }
 0x739   :  { %v1471_v23 = vadd.f32 %v2246_v6, %v1460_v45  ;;  %v1523_v6 = vrot.slane %v1506_v5, %v1522_v0 }
 0x73a   :  { %2369 = vmatpush3.bf16.msra.mxu1 %v2645_v51 }
 0x73b   :  { %v1473_v30 = vpack.c.bf16 %v1471_v23, %v1470_v46 }
 0x73d   :  { %1731 = vmatmul.mubr.bf16.gmra.mxu1 %v1473_v30  ;;  %1784 = vmatmul.mubr.bf16.gmra.mxu0 %v1473_v30 }
 0x7bc   :  { %v1722_v28 = vpop.f32.mrf.mxu1  ;;  %v1775_v58 = vpop.f32.mrf.mxu0 }
 0x7bd   :  { %v1723_v16 = vadd.f32 %v1722_v28, %v1511_v1  ;;  %v1776_v39 = vadd.f32 %v1775_v58, %v1519_v9 }
 0x7be   :  { %v1724_v36 = vpop.f32.mrf.mxu1  ;;  %v1777_v48 = vpop.f32.mrf.mxu0 }
 0x7bf   :  { %v1725_v4 = vadd.f32 %v1724_v36, %v1515_v62  ;;  %v1778_v12 = vadd.f32 %v1777_v48, %v1523_v6  ;;  %v1794_v8 = vmax.f32 %v1723_v16, 0.0  ;;  %v1796_v21 = vmax.f32 %v1776_v39, 0.0 }
 0x7c0   :  { %v1726_v14 = vpop.f32.mrf.mxu1  ;;  %v1779_v34 = vpop.f32.mrf.mxu0 }
 0x7c1   :  { %v1727_v7 = vadd.f32 %v1726_v14, %v1511_v1  ;;  %v1780_v15 = vadd.f32 %v1779_v34, %v1519_v9  ;;  %v1795_v25 = vmax.f32 %v1725_v4, 0.0  ;;  %v1797_v26 = vmax.f32 %v1778_v12, 0.0 }
 0x7c2   :  { %v1728_v17 = vpop.f32.mrf.mxu1  ;;  %v1781_v10 = vpop.f32.mrf.mxu0 }
 0x7c3   :  { %v1729_v19 = vadd.f32 %v1728_v17, %v1515_v62  ;;  %v1782_v20 = vadd.f32 %v1781_v10, %v1523_v6  ;;  %v1798_v22 = vmax.f32 %v1727_v7, 0.0  ;;  %v1800_v11 = vmax.f32 %v1780_v15, 0.0 }
 0x7c5   :  { %v1799_v29 = vmax.f32 %v1729_v19, 0.0  ;;  %v1801_v3 = vmax.f32 %v1782_v20, 0.0  ;;  %v1810_v35 = vpack.c.bf16 %v1798_v22, %v1794_v8  ;;  %v1812_v37 = vpack.c.bf16 %v1800_v11, %v1796_v21 }
 0x7c7   :  { %v1811_v32 = vpack.c.bf16 %v1799_v29, %v1795_v25  ;;  %v1813_v33 = vpack.c.bf16 %v1801_v3, %v1797_v26 }
 0x7c9   :  { %2113 = vmatprep.mubr.bf16.mxu1 %v1811_v32  ;;  %2162 = vmatprep.mubr.bf16.mxu0 %v1813_v33 }
 0x7ca   :  { %2114 = vmatmul.mubr.bf16.vlgmr.msra.gmra.mxu1 %v1810_v35  ;;  %2163 = vmatmul.mubr.bf16.vlgmr.msra.gmra.mxu0 %v1812_v37 }
 0x7fd   :  { %v1732_v40 = vpop.f32.mrf.mxu1  ;;  %v1785_v13 = vpop.f32.mrf.mxu0 }
 0x7fe   :  { %v1733_v50 = vadd.f32 %v1732_v40, %v1511_v1  ;;  %v1786_v24 = vadd.f32 %v1785_v13, %v1519_v9 }
 0x7ff   :  { %v1734_v18 = vpop.f32.mrf.mxu1  ;;  %v1787_v41 = vpop.f32.mrf.mxu0 }
 0x800   :  { %v1735_v46 = vadd.f32 %v1734_v18, %v1515_v62  ;;  %v1788_v23 = vadd.f32 %v1787_v41, %v1523_v6  ;;  %v1802_v60 = vmax.f32 %v1733_v50, 0.0  ;;  %v1804_v63 = vmax.f32 %v1786_v24, 0.0 }
 0x801   :  { %v1736_v43 = vpop.f32.mrf.mxu1  ;;  %v1789_v45 = vpop.f32.mrf.mxu0 }
 0x802   :  { %v1737_v30 = vadd.f32 %v1736_v43, %v1511_v1  ;;  %v1790_v49 = vadd.f32 %v1789_v45, %v1519_v9  ;;  %v1803_v55 = vmax.f32 %v1735_v46, 0.0  ;;  %v1805_v51 = vmax.f32 %v1788_v23, 0.0 }
 0x803   :  { %v1738_v52 = vpop.f32.mrf.mxu1  ;;  %v1791_v38 = vpop.f32.mrf.mxu0 }
 0x804   :  { %v1739_v54 = vadd.f32 %v1738_v52, %v1515_v62  ;;  %v1792_v27 = vadd.f32 %v1791_v38, %v1523_v6  ;;  %v1806_v31 = vmax.f32 %v1737_v30, 0.0  ;;  %v1808_v56 = vmax.f32 %v1790_v49, 0.0  ;;  %v2279_v62 = vld [vmem:[%s3479_s9] ss:$0 sm:$0xff]  ;;  %s2759_s9 = smov [#allocation2]  }
 0x805   :  { %s2192_s5 = sshll.u32 %s2759_s9, 4  ;;  %s2193_s5 = int_to_ptr.vmem [resolvable:$true] %s2192_s5 }
 0x806   :  { %v1807_v57 = vmax.f32 %v1739_v54, 0.0  ;;  %v1809_v44 = vmax.f32 %v1792_v27, 0.0  ;;  %v1814_v59 = vpack.c.bf16 %v1806_v31, %v1802_v60  ;;  %v1816_v5 = vpack.c.bf16 %v1808_v56, %v1804_v63  ;;  %s2731_s27 = scalar_lea.vmem %s2193_s5, 512  ;;  %p2736_p1 = scmp.lt.s32.totalorder %s2193_s5, %s2193_s5 }
 0x807   :  { %p2732_p0 = scmp.ne.s32.totalorder %s2193_s5, %s2731_s27  ;;  %p2737_p2 = scmp.lt.s32.totalorder %s2731_s27, %s2731_s27 }
 0x808   :  { %v1815_v0 = vpack.c.bf16 %v1807_v57, %v1803_v55  ;;  %v1817_v2 = vpack.c.bf16 %v1809_v44, %v1805_v51 }
 0x809   :  { %p2738_p3 = por %p2737_p2, %p2736_p1 }
 0x80a   :  { %2121 = vmatprep.mubr.bf16.mxu1 %v1815_v0  ;;  %2170 = vmatprep.mubr.bf16.mxu0 %v1817_v2 }
 0x80b   :  { %2122 = vmatmul.mubr.bf16.gmra.mxu1 %v1814_v59  ;;  %2171 = vmatmul.mubr.bf16.gmra.mxu0 %v1816_v5  ;;  %p2739_p4 = pnand %p2738_p3, %p2732_p0 }
 0x88a   :  { %v2370_v28 = vpop.f32.mrf.mxu1  ;;  %v2398_v58 = vpop.f32.mrf.mxu0 }
 0x88c   :  { %v2371_v6 = vpop.f32.mrf.mxu1  ;;  %v2399_v1 = vpop.f32.mrf.mxu0 }
 0x88d   :  { %v2372_v9 = vadd.f32 %v2371_v6, %v2370_v28  ;;  %v2400_v34 = vadd.f32 %v2399_v1, %v2398_v58 }
 0x88e   :  { %v2373_v36 = vpop.f32.mrf.mxu1  ;;  %v2401_v48 = vpop.f32.mrf.mxu0 }
 0x88f   :  { %v2116_v14 = vadd.f32 %v2372_v9, %v2279_v62 }
 0x890   :  { %v2374_v4 = vpop.f32.mrf.mxu1  ;;  %v2402_v12 = vpop.f32.mrf.mxu0 }
 0x891   :  { %v2165_v7 = vadd.f32 %v2400_v34, %v2116_v14  ;;  %v2375_v15 = vadd.f32 %v2374_v4, %v2373_v36  ;;  %v2403_v17 = vadd.f32 %v2402_v12, %v2401_v48 }
 0x893   :  { %v2179_v16 = vadd.f32 %v2165_v7, %v3203_v47  ;;  %v2119_v39 = vadd.f32 %v2375_v15, %v2279_v62 }
 0x895   :  { %2183 = vst [vmem:[#allocation2] sm:$0xff] %v2179_v16  ;;  %v2168_v10 = vadd.f32 %v2403_v17, %v2119_v39 }
 0x897   :  { %v2180_v19 = vadd.f32 %v2168_v10, %v3212_v53 }
 0x899   :  { %2184 = vst [vmem:[#allocation2 + $0x8] sm:$0xff] %v2180_v19 }
 0x8cb   :  { %v2376_v20 = vpop.f32.mrf.mxu1  ;;  %v2404_v22 = vpop.f32.mrf.mxu0 }
 0x8cd   :  { %v2377_v11 = vpop.f32.mrf.mxu1  ;;  %v2405_v25 = vpop.f32.mrf.mxu0 }
 0x8ce   :  { %v2378_v26 = vadd.f32 %v2377_v11, %v2376_v20  ;;  %v2406_v21 = vadd.f32 %v2405_v25, %v2404_v22 }
 0x8cf   :  { %v2379_v29 = vpop.f32.mrf.mxu1  ;;  %v2407_v3 = vpop.f32.mrf.mxu0 }
 0x8d0   :  { %v2124_v8 = vadd.f32 %v2378_v26, %v2279_v62 }
 0x8d1   :  { %v2380_v32 = vpop.f32.mrf.mxu1  ;;  %v2408_v33 = vpop.f32.mrf.mxu0 }
 0x8d2   :  { %v2173_v35 = vadd.f32 %v2406_v21, %v2124_v8  ;;  %v2381_v47 = vadd.f32 %v2380_v32, %v2379_v29  ;;  %v2409_v13 = vadd.f32 %v2408_v33, %v2407_v3 }
 0x8d4   :  { %v2181_v37 = vadd.f32 %v2173_v35, %v3221_v61  ;;  %v2127_v40 = vadd.f32 %v2381_v47, %v2279_v62 }
 0x8d6   :  { %2185 = vst [vmem:[#allocation2 + $0x10] sm:$0xff] %v2181_v37  ;;  %v2176_v53 = vadd.f32 %v2409_v13, %v2127_v40 }
 0x8d8   :  { %v2182_v18 = vadd.f32 %v2176_v53, %v3230_v42 }
 0x8da   :  { %2186 = vst [vmem:[#allocation2 + $0x18] sm:$0xff] %v2182_v18 }
 0x8db   :  { %2742 = shalt.err (!%p2739_p4)
}
 0x8dc   :  { %s2760_s28 = smov 128   ;;  %s2761_s0 = smov 8  }
 0x8dd   :  { %2198 = dma.vmem_to_hbm [thread:$0]  %s2193_s5, 512, %s3480_s10, [#allocation3], %s2760_s28, %s2760_s28, %s2761_s0  }
 0x8de   :  { %2751 = dma.done.wait [#allocation3], 512  }
 0x8df   :  { %2752 = vsyncadd [#allocation3], 4294966784 }
 0x8e0   :  { %2202 = vsyncpa [#allocation3], 1 }

</bundles_post_ra>
